<compile_context>
chip_gen: v7x
topology: tpu7x:2x2x1
jax: 0.10.0
libtpu: 0.0.40
codegen_flags: <defaults>
</compile_context>

<pallas_src>
import functools

import jax
import jax.numpy as jnp
from jax.experimental import pallas as pl
from jax.experimental.pallas import tpu as pltpu

LEAKY_SLOPE = 0.01
BN_EPS = 1e-5
PAD_TOP = 8   # sublane-tile aligned top pad -> interior scratch stores are unmasked


def _branch3_kernel(x_ref,
                    wb1_ref, g1_ref, be1_ref,
                    wb2_ref, g2_ref, be2_ref,
                    wb3_ref, g3_ref, be3_ref,
                    gsum_ref, gbc_ref,
                    o_ref,
                    padx_ref, pada_ref,
                    *, n, h, w):
    """Fused Branch3 forward, W folded into the lane axis.

    x_ref:      (N, H, W*Cin)            un-padded, W-folded input
    wb*_ref:    (3, W*Cin_l, W*Cout)     block-banded weights, one matrix per ky tap
    g*/be*_ref: (1, Cout)                BN gamma / beta
    gsum_ref:   (W*Cout, Cout)           column -> per-channel sum matrix
    gbc_ref:    (Cout, W*Cout)           per-channel -> column broadcast matrix
    o_ref:      (N, H, W*Cout)           W-folded output (lane-dense, unmasked stores)
    padx_ref:   (N, H+PAD_TOP+1, W*Cin)  H-haloed layer-1 input scratch
    pada_ref:   (N, H+PAD_TOP+1, W*Cout) H-haloed activation scratch (reused layers 2/3)
    """
    rows = n * h
    rows_total = n * h * w
    inv = 1.0 / rows_total
    wc_in = x_ref.shape[-1]
    wc_out = o_ref.shape[-1]

    # ---- one-time halo-row zeroing (interiors are always fully overwritten) ----
    padx_ref[:, PAD_TOP - 1:PAD_TOP, :] = jnp.zeros((n, 1, wc_in), jnp.float32)
    padx_ref[:, PAD_TOP + h:PAD_TOP + h + 1, :] = jnp.zeros((n, 1, wc_in), jnp.float32)
    pada_ref[:, PAD_TOP - 1:PAD_TOP, :] = jnp.zeros((n, 1, wc_out), jnp.float32)
    pada_ref[:, PAD_TOP + h:PAD_TOP + h + 1, :] = jnp.zeros((n, 1, wc_out), jnp.float32)

    # Layer-1 input into the haloed scratch (zero padding folded into the kernel).
    padx_ref[:, PAD_TOP:PAD_TOP + h, :] = x_ref[...]

    def conv3x3(pad_ref, wb_ref):
        # 3x3 SAME conv = 3 lane-dense MXU dots (one per ky tap). The kx taps and the
        # x-edge zeroing live inside the block-banded weights, so there are no per-tap
        # window slices / relayouts and the accumulator is (N*H, W*Cout) ~ 4 vregs.
        wc = pad_ref.shape[-1]
        acc = jnp.zeros((rows, wc_out), jnp.float32)
        for ky in range(3):                                   # fully unrolled
            start = PAD_TOP - 1 + ky
            x2d = pad_ref[:, start:start + h, :].reshape(rows, wc)
            acc = acc + jnp.dot(x2d, wb_ref[ky],
                                preferred_element_type=jnp.float32)
        return acc

    def bn_act(y, g_ref, be_ref, relu):
        # Training-mode BatchNorm (biased variance, eps=1e-5), two-pass variance.
        # Per-channel reduction / broadcast go through the tiny gsum/gbc matmuls so the
        # working layout stays lane-dense. Conv bias is cancelled by the mean subtraction.
        s1 = jnp.sum(y, axis=0, keepdims=True)                                      # (1, W*C)
        mean_c = jnp.dot(s1, gsum_ref[...],
                         preferred_element_type=jnp.float32) * inv                  # (1, C)
        mean_col = jnp.dot(mean_c, gbc_ref[...],
                           preferred_element_type=jnp.float32)                      # (1, W*C)
        d = y - mean_col
        s2 = jnp.sum(d * d, axis=0, keepdims=True)                                  # (1, W*C)
        var_c = jnp.dot(s2, gsum_ref[...],
                        preferred_element_type=jnp.float32) * inv                   # (1, C)
        scale_c = g_ref[...] * jax.lax.rsqrt(var_c + BN_EPS)                        # (1, C)
        shift_c = be_ref[...] - mean_c * scale_c
        scale_col = jnp.dot(scale_c, gbc_ref[...], preferred_element_type=jnp.float32)
        shift_col = jnp.dot(shift_c, gbc_ref[...], preferred_element_type=jnp.float32)
        out = y * scale_col + shift_col
        if relu:
            out = jnp.where(out >= 0, out, LEAKY_SLOPE * out)
        return out

    a1 = bn_act(conv3x3(padx_ref, wb1_ref), g1_ref, be1_ref, relu=True)
    pada_ref[:, PAD_TOP:PAD_TOP + h, :] = a1.reshape(n, h, wc_out)
    a2 = bn_act(conv3x3(pada_ref, wb2_ref), g2_ref, be2_ref, relu=True)
    pada_ref[:, PAD_TOP:PAD_TOP + h, :] = a2.reshape(n, h, wc_out)
    a3 = bn_act(conv3x3(pada_ref, wb3_ref), g3_ref, be3_ref, relu=False)  # no LeakyReLU after bt3_3
    o_ref[...] = a3.reshape(n, h, wc_out)


def _full_spec(shape):
    # Whole array as a single block (block == full array dims -> exempt from (8,128) rule).
    return pl.BlockSpec(shape, lambda i: (0,) * len(shape))


def _banded_weights(w_hwio, width):
    """Fold kx taps + x-edge zero padding into block-banded matrices.

    w_hwio (3,3,Cin,Cout) -> (3, width*Cin, width*Cout) with
    wb[ky, x_in*Cin+ci, x_out*Cout+co] = w[ky, x_in-x_out+1, ci, co] when |x_in-x_out| <= 1.
    """
    _, _, cin, cout = w_hwio.shape
    xs = jnp.arange(width)
    sel = ((xs[:, None] - xs[None, :])[None, :, :] ==
           (jnp.arange(3) - 1)[:, None, None]).astype(jnp.float32)   # (kx, x_in, x_out)
    wb = jnp.einsum('ykio,kpq->ypiqo', w_hwio, sel)                  # (ky, x_in, ci, x_out, co)
    return wb.reshape(3, width * cin, width * cout)


def branch3_pallas(x_nhwc, params):
    """x_nhwc: (N, H, W, Cin) float32. Returns (N, H, W, Cout) float32."""
    n, h, w, cin = x_nhwc.shape
    cout = params["w1"].shape[-1]
    wc_in, wc_out = w * cin, w * cout

    x_fold = x_nhwc.reshape(n, h, wc_in)          # fold W into the lane axis

    wb1 = _banded_weights(params["w1"], w)
    wb2 = _banded_weights(params["w2"], w)
    wb3 = _banded_weights(params["w3"], w)
    g1, g2, g3 = (params[f"gamma{i}"].reshape(1, cout) for i in (1, 2, 3))
    b1, b2, b3 = (params[f"beta{i}"].reshape(1, cout) for i in (1, 2, 3))

    gsum = jnp.tile(jnp.eye(cout, dtype=jnp.float32), (w, 1))   # (W*Cout, Cout)
    gbc = gsum.T                                                # (Cout, W*Cout)

    kernel = functools.partial(_branch3_kernel, n=n, h=h, w=w)

    # NOTE: total VMEM footprint here is well under 1 MiB, so default double buffering of
    # the single-step full-array blocks is harmless; Buffered(1)/manual DMA not needed.
    out = pl.pallas_call(
        kernel,
        out_shape=jax.ShapeDtypeStruct((n, h, wc_out), jnp.float32),
        grid_spec=pltpu.PrefetchScalarGridSpec(
            num_scalar_prefetch=0,
            grid=(1,),   # single step: the whole fused forward is one kernel invocation
            in_specs=[
                _full_spec((n, h, wc_in)),
                _full_spec((3, wc_in, wc_out)), _full_spec((1, cout)), _full_spec((1, cout)),
                _full_spec((3, wc_out, wc_out)), _full_spec((1, cout)), _full_spec((1, cout)),
                _full_spec((3, wc_out, wc_out)), _full_spec((1, cout)), _full_spec((1, cout)),
                _full_spec((wc_out, cout)), _full_spec((cout, wc_out)),
            ],
            out_specs=_full_spec((n, h, wc_out)),
            scratch_shapes=[
                pltpu.VMEM((n, h + PAD_TOP + 1, wc_in), jnp.float32),   # haloed layer-1 input
                pltpu.VMEM((n, h + PAD_TOP + 1, wc_out), jnp.float32),  # haloed act (layers 2/3)
            ],
        ),
        compiler_params=pltpu.CompilerParams(
            dimension_semantics=("arbitrary",)),
    )(x_fold, wb1, g1, b1, wb2, g2, b2, wb3, g3, b3, gsum, gbc)

    return out.reshape(n, h, w, cout)


def init_branch3_params(key, in_ch, out_ch):
    """Deterministic parameter init matching the shapes of Branch3.__init__."""
    ks = jax.random.split(key, 6)
    params = {}
    chans = [(in_ch, out_ch), (out_ch, out_ch), (out_ch, out_ch)]
    for i, (ci, co) in enumerate(chans, start=1):
        fan_in = ci * 9
        scale = 1.0 / jnp.sqrt(jnp.float32(fan_in))
        params[f"w{i}"] = scale * jax.random.normal(
            ks[2 * (i - 1)], (3, 3, ci, co), dtype=jnp.float32)        # HWIO
        params[f"b{i}"] = scale * jax.random.normal(
            ks[2 * (i - 1) + 1], (co,), dtype=jnp.float32)             # cancelled by BN
        params[f"gamma{i}"] = jnp.ones((co,), dtype=jnp.float32)
        params[f"beta{i}"] = jnp.zeros((co,), dtype=jnp.float32)
    return params


@jax.jit
def branch3_forward(x_nchw, params):
    """Forward pass of Branch3. Input/output in NCHW (PyTorch convention)."""
    x = jnp.transpose(x_nchw, (0, 2, 3, 1)).astype(jnp.float32)        # NCHW -> NHWC
    y = branch3_pallas(x, params)
    return jnp.transpose(y, (0, 3, 1, 2))                              # NHWC -> NCHW


# ----------------------------- pure-JAX reference ------------------------------------
def _ref_layer(x, w, b, g, beta, relu):
    y = jax.lax.conv_general_dilated(
        x, w, window_strides=(1, 1), padding="SAME",
        dimension_numbers=("NHWC", "HWIO", "NHWC")) + b
    mean = y.mean(axis=(0, 1, 2), keepdims=True)
    var = ((y - mean) ** 2).mean(axis=(0, 1, 2), keepdims=True)
    y = g * (y - mean) * jax.lax.rsqrt(var + BN_EPS) + beta
    if relu:
        y = jnp.where(y >= 0, y, LEAKY_SLOPE * y)
    return y


def _ref_forward(x_nchw, p):
    x = jnp.transpose(x_nchw, (0, 2, 3, 1)).astype(jnp.float32)
    x = _ref_layer(x, p["w1"], p["b1"], p["gamma1"], p["beta1"], True)
    x = _ref_layer(x, p["w2"], p["b2"], p["gamma2"], p["beta2"], True)
    x = _ref_layer(x, p["w3"], p["b3"], p["gamma3"], p["beta3"], False)
    return jnp.transpose(x, (0, 3, 1, 2))


if __name__ == "__main__":
    key = jax.random.PRNGKey(0)
    k_x, k_p = jax.random.split(key)

    N, IN_CH, OUT_CH, H, W = 2, 4, 8, 16, 16
    x = jax.random.normal(k_x, (N, IN_CH, H, W), dtype=jnp.float32)    # NCHW like PyTorch
    params = init_branch3_params(k_p, IN_CH, OUT_CH)

    out = branch3_forward(x, params)
    out = jax.block_until_ready(out)

    assert out.shape == (N, OUT_CH, H, W), out.shape

    ref = jax.block_until_ready(_ref_forward(x, params))
    assert jnp.allclose(out, ref, atol=2e-3, rtol=2e-3), float(jnp.max(jnp.abs(out - ref)))

    print("KERNEL_OK")
</pallas_src>

<mosaic_0001>
module attributes {stable_mosaic.version = 11 : i64} {
  func.func @_branch3_kernel(%arg0: i32, %arg1: memref<2x16x64xf32, #tpu.memory_space<vmem>>, %arg2: memref<3x64x128xf32, #tpu.memory_space<vmem>>, %arg3: memref<1x8xf32, #tpu.memory_space<vmem>>, %arg4: memref<1x8xf32, #tpu.memory_space<vmem>>, %arg5: memref<3x128x128xf32, #tpu.memory_space<vmem>>, %arg6: memref<1x8xf32, #tpu.memory_space<vmem>>, %arg7: memref<1x8xf32, #tpu.memory_space<vmem>>, %arg8: memref<3x128x128xf32, #tpu.memory_space<vmem>>, %arg9: memref<1x8xf32, #tpu.memory_space<vmem>>, %arg10: memref<1x8xf32, #tpu.memory_space<vmem>>, %arg11: memref<128x8xf32, #tpu.memory_space<vmem>>, %arg12: memref<8x128xf32, #tpu.memory_space<vmem>>, %arg13: memref<2x16x128xf32, #tpu.memory_space<vmem>>, %arg14: memref<2x25x64xf32, #tpu.memory_space<vmem>>, %arg15: memref<2x25x128xf32, #tpu.memory_space<vmem>>) attributes {dimension_semantics = [#tpu.dimension_semantics<arbitrary>], iteration_bounds = array<i64: 1>, scalar_prefetch = 0 : i64, scratch_operands = 2 : i64, tpu.core_type = #tpu.core_type<tc>, window_params = [{pipeline_mode = #tpu.pipeline_mode<synchronous>, transform_indices = @transform_0, window_bounds = array<i64: 2, 16, 64>}, {pipeline_mode = #tpu.pipeline_mode<synchronous>, transform_indices = @transform_1, window_bounds = array<i64: 3, 64, 128>}, {pipeline_mode = #tpu.pipeline_mode<synchronous>, transform_indices = @transform_2, window_bounds = array<i64: 1, 8>}, {pipeline_mode = #tpu.pipeline_mode<synchronous>, transform_indices = @transform_3, window_bounds = array<i64: 1, 8>}, {pipeline_mode = #tpu.pipeline_mode<synchronous>, transform_indices = @transform_4, window_bounds = array<i64: 3, 128, 128>}, {pipeline_mode = #tpu.pipeline_mode<synchronous>, transform_indices = @transform_5, window_bounds = array<i64: 1, 8>}, {pipeline_mode = #tpu.pipeline_mode<synchronous>, transform_indices = @transform_6, window_bounds = array<i64: 1, 8>}, {pipeline_mode = #tpu.pipeline_mode<synchronous>, transform_indices = @transform_7, window_bounds = array<i64: 3, 128, 128>}, {pipeline_mode = #tpu.pipeline_mode<synchronous>, transform_indices = @transform_8, window_bounds = array<i64: 1, 8>}, {pipeline_mode = #tpu.pipeline_mode<synchronous>, transform_indices = @transform_9, window_bounds = array<i64: 1, 8>}, {pipeline_mode = #tpu.pipeline_mode<synchronous>, transform_indices = @transform_10, window_bounds = array<i64: 128, 8>}, {pipeline_mode = #tpu.pipeline_mode<synchronous>, transform_indices = @transform_11, window_bounds = array<i64: 8, 128>}, {pipeline_mode = #tpu.pipeline_mode<synchronous>, transform_indices = @transform_12, window_bounds = array<i64: 2, 16, 128>}]} {
    %cst = arith.constant 0.000000e+00 : f32
    %0 = vector.broadcast %cst : f32 to vector<2x1x64xf32>
    %c0 = arith.constant 0 : index
    %c7 = arith.constant 7 : index
    %c0_0 = arith.constant 0 : index
    %1 = vector.load %arg14[%c0, %c7, %c0_0] : memref<2x25x64xf32, #tpu.memory_space<vmem>>, vector<2x1x64xf32>
    tpu.vector_store %arg14[%c0, %c7, %c0_0], %0 {strides = array<i32>} : memref<2x25x64xf32, #tpu.memory_space<vmem>>, vector<2x1x64xf32>,
    %cst_1 = arith.constant 0.000000e+00 : f32
    %2 = vector.broadcast %cst_1 : f32 to vector<2x1x64xf32>
    %c0_2 = arith.constant 0 : index
    %c24 = arith.constant 24 : index
    %c0_3 = arith.constant 0 : index
    %3 = vector.load %arg14[%c0_2, %c24, %c0_3] : memref<2x25x64xf32, #tpu.memory_space<vmem>>, vector<2x1x64xf32>
    tpu.vector_store %arg14[%c0_2, %c24, %c0_3], %2 {strides = array<i32>} : memref<2x25x64xf32, #tpu.memory_space<vmem>>, vector<2x1x64xf32>,
    %cst_4 = arith.constant 0.000000e+00 : f32
    %4 = vector.broadcast %cst_4 : f32 to vector<2x1x128xf32>
    %c0_5 = arith.constant 0 : index
    %c7_6 = arith.constant 7 : index
    %c0_7 = arith.constant 0 : index
    %5 = vector.load %arg15[%c0_5, %c7_6, %c0_7] : memref<2x25x128xf32, #tpu.memory_space<vmem>>, vector<2x1x128xf32>
    tpu.vector_store %arg15[%c0_5, %c7_6, %c0_7], %4 {strides = array<i32>} : memref<2x25x128xf32, #tpu.memory_space<vmem>>, vector<2x1x128xf32>,
    %cst_8 = arith.constant 0.000000e+00 : f32
    %6 = vector.broadcast %cst_8 : f32 to vector<2x1x128xf32>
    %c0_9 = arith.constant 0 : index
    %c24_10 = arith.constant 24 : index
    %c0_11 = arith.constant 0 : index
    %7 = vector.load %arg15[%c0_9, %c24_10, %c0_11] : memref<2x25x128xf32, #tpu.memory_space<vmem>>, vector<2x1x128xf32>
    tpu.vector_store %arg15[%c0_9, %c24_10, %c0_11], %6 {strides = array<i32>} : memref<2x25x128xf32, #tpu.memory_space<vmem>>, vector<2x1x128xf32>,
    %c0_12 = arith.constant 0 : index
    %c0_13 = arith.constant 0 : index
    %c0_14 = arith.constant 0 : index
    %8 = vector.load %arg1[%c0_12, %c0_13, %c0_14] : memref<2x16x64xf32, #tpu.memory_space<vmem>>, vector<2x16x64xf32>
    %c0_15 = arith.constant 0 : index
    %c8 = arith.constant 8 : index
    %c0_16 = arith.constant 0 : index
    %9 = vector.load %arg14[%c0_15, %c8, %c0_16] : memref<2x25x64xf32, #tpu.memory_space<vmem>>, vector<2x16x64xf32>
    tpu.vector_store %arg14[%c0_15, %c8, %c0_16], %8 {strides = array<i32>} : memref<2x25x64xf32, #tpu.memory_space<vmem>>, vector<2x16x64xf32>,
    %cst_17 = arith.constant 0.000000e+00 : f32
    %10 = vector.broadcast %cst_17 : f32 to vector<32x128xf32>
    %c0_18 = arith.constant 0 : index
    %c7_19 = arith.constant 7 : index
    %c0_20 = arith.constant 0 : index
    %11 = vector.load %arg14[%c0_18, %c7_19, %c0_20] : memref<2x25x64xf32, #tpu.memory_space<vmem>>, vector<2x16x64xf32>
    %12 = vector.shape_cast %11 : vector<2x16x64xf32> to vector<32x64xf32>
    %c0_21 = arith.constant 0 : index
    %c0_22 = arith.constant 0 : index
    %c0_23 = arith.constant 0 : index
    %13 = vector.load %arg2[%c0_21, %c0_22, %c0_23] : memref<3x64x128xf32, #tpu.memory_space<vmem>>, vector<1x64x128xf32>
    %14 = vector.shape_cast %13 : vector<1x64x128xf32> to vector<64x128xf32>
    %cst_24 = arith.constant dense<0.000000e+00> : vector<32x128xf32>
    %15 = tpu.matmul %12, %14, %cst_24 {dimension_numbers = #tpu.dot_dimension_numbers<[1], [0], [0], [1], [0, 0, 1, 1], [], []>} : vector<32x64xf32>, vector<64x128xf32>, vector<32x128xf32> -> vector<32x128xf32>
    %16 = arith.addf %10, %15 : vector<32x128xf32>
    %c0_25 = arith.constant 0 : index
    %c8_26 = arith.constant 8 : index
    %c0_27 = arith.constant 0 : index
    %17 = vector.load %arg14[%c0_25, %c8_26, %c0_27] : memref<2x25x64xf32, #tpu.memory_space<vmem>>, vector<2x16x64xf32>
    %18 = vector.shape_cast %17 : vector<2x16x64xf32> to vector<32x64xf32>
    %c1 = arith.constant 1 : index
    %c0_28 = arith.constant 0 : index
    %c0_29 = arith.constant 0 : index
    %19 = vector.load %arg2[%c1, %c0_28, %c0_29] : memref<3x64x128xf32, #tpu.memory_space<vmem>>, vector<1x64x128xf32>
    %20 = vector.shape_cast %19 : vector<1x64x128xf32> to vector<64x128xf32>
    %cst_30 = arith.constant dense<0.000000e+00> : vector<32x128xf32>
    %21 = tpu.matmul %18, %20, %cst_30 {dimension_numbers = #tpu.dot_dimension_numbers<[1], [0], [0], [1], [0, 0, 1, 1], [], []>} : vector<32x64xf32>, vector<64x128xf32>, vector<32x128xf32> -> vector<32x128xf32>
    %22 = arith.addf %16, %21 : vector<32x128xf32>
    %c0_31 = arith.constant 0 : index
    %c9 = arith.constant 9 : index
    %c0_32 = arith.constant 0 : index
    %23 = vector.load %arg14[%c0_31, %c9, %c0_32] : memref<2x25x64xf32, #tpu.memory_space<vmem>>, vector<2x16x64xf32>
    %24 = vector.shape_cast %23 : vector<2x16x64xf32> to vector<32x64xf32>
    %c2 = arith.constant 2 : index
    %c0_33 = arith.constant 0 : index
    %c0_34 = arith.constant 0 : index
    %25 = vector.load %arg2[%c2, %c0_33, %c0_34] : memref<3x64x128xf32, #tpu.memory_space<vmem>>, vector<1x64x128xf32>
    %26 = vector.shape_cast %25 : vector<1x64x128xf32> to vector<64x128xf32>
    %cst_35 = arith.constant dense<0.000000e+00> : vector<32x128xf32>
    %27 = tpu.matmul %24, %26, %cst_35 {dimension_numbers = #tpu.dot_dimension_numbers<[1], [0], [0], [1], [0, 0, 1, 1], [], []>} : vector<32x64xf32>, vector<64x128xf32>, vector<32x128xf32> -> vector<32x128xf32>
    %28 = arith.addf %22, %27 : vector<32x128xf32>
    %cst_36 = arith.constant dense<0.000000e+00> : vector<128xf32>
    %29 = vector.multi_reduction <add>, %28, %cst_36 [0] : vector<32x128xf32> to vector<128xf32>
    %30 = vector.shape_cast %29 : vector<128xf32> to vector<1x128xf32>
    %c0_37 = arith.constant 0 : index
    %c0_38 = arith.constant 0 : index
    %31 = vector.load %arg11[%c0_37, %c0_38] : memref<128x8xf32, #tpu.memory_space<vmem>>, vector<128x8xf32>
    %cst_39 = arith.constant dense<0.000000e+00> : vector<1x8xf32>
    %32 = tpu.matmul %30, %31, %cst_39 {dimension_numbers = #tpu.dot_dimension_numbers<[1], [0], [0], [1], [0, 0, 1, 1], [], []>} : vector<1x128xf32>, vector<128x8xf32>, vector<1x8xf32> -> vector<1x8xf32>
    %cst_40 = arith.constant 0.001953125 : f32
    %33 = vector.broadcast %cst_40 : f32 to vector<1x8xf32>
    %34 = arith.mulf %32, %33 : vector<1x8xf32>
    %c0_41 = arith.constant 0 : index
    %c0_42 = arith.constant 0 : index
    %35 = vector.load %arg12[%c0_41, %c0_42] : memref<8x128xf32, #tpu.memory_space<vmem>>, vector<8x128xf32>
    %cst_43 = arith.constant dense<0.000000e+00> : vector<1x128xf32>
    %36 = tpu.matmul %34, %35, %cst_43 {dimension_numbers = #tpu.dot_dimension_numbers<[1], [0], [0], [1], [0, 0, 1, 1], [], []>} : vector<1x8xf32>, vector<8x128xf32>, vector<1x128xf32> -> vector<1x128xf32>
    %37 = vector.broadcast %36 : vector<1x128xf32> to vector<32x128xf32>
    %38 = arith.subf %28, %37 : vector<32x128xf32>
    %39 = arith.mulf %38, %38 : vector<32x128xf32>
    %cst_44 = arith.constant dense<0.000000e+00> : vector<128xf32>
    %40 = vector.multi_reduction <add>, %39, %cst_44 [0] : vector<32x128xf32> to vector<128xf32>
    %41 = vector.shape_cast %40 : vector<128xf32> to vector<1x128xf32>
    %c0_45 = arith.constant 0 : index
    %c0_46 = arith.constant 0 : index
    %42 = vector.load %arg11[%c0_45, %c0_46] : memref<128x8xf32, #tpu.memory_space<vmem>>, vector<128x8xf32>
    %cst_47 = arith.constant dense<0.000000e+00> : vector<1x8xf32>
    %43 = tpu.matmul %41, %42, %cst_47 {dimension_numbers = #tpu.dot_dimension_numbers<[1], [0], [0], [1], [0, 0, 1, 1], [], []>} : vector<1x128xf32>, vector<128x8xf32>, vector<1x8xf32> -> vector<1x8xf32>
    %cst_48 = arith.constant 0.001953125 : f32
    %44 = vector.broadcast %cst_48 : f32 to vector<1x8xf32>
    %45 = arith.mulf %43, %44 : vector<1x8xf32>
    %c0_49 = arith.constant 0 : index
    %c0_50 = arith.constant 0 : index
    %46 = vector.load %arg3[%c0_49, %c0_50] : memref<1x8xf32, #tpu.memory_space<vmem>>, vector<1x8xf32>
    %cst_51 = arith.constant 9.99999974E-6 : f32
    %47 = vector.broadcast %cst_51 : f32 to vector<1x8xf32>
    %48 = arith.addf %45, %47 : vector<1x8xf32>
    %49 = math.rsqrt %48 : vector<1x8xf32>
    %50 = arith.mulf %46, %49 : vector<1x8xf32>
    %c0_52 = arith.constant 0 : index
    %c0_53 = arith.constant 0 : index
    %51 = vector.load %arg4[%c0_52, %c0_53] : memref<1x8xf32, #tpu.memory_space<vmem>>, vector<1x8xf32>
    %52 = arith.mulf %34, %50 : vector<1x8xf32>
    %53 = arith.subf %51, %52 : vector<1x8xf32>
    %c0_54 = arith.constant 0 : index
    %c0_55 = arith.constant 0 : index
    %54 = vector.load %arg12[%c0_54, %c0_55] : memref<8x128xf32, #tpu.memory_space<vmem>>, vector<8x128xf32>
    %cst_56 = arith.constant dense<0.000000e+00> : vector<1x128xf32>
    %55 = tpu.matmul %50, %54, %cst_56 {dimension_numbers = #tpu.dot_dimension_numbers<[1], [0], [0], [1], [0, 0, 1, 1], [], []>} : vector<1x8xf32>, vector<8x128xf32>, vector<1x128xf32> -> vector<1x128xf32>
    %c0_57 = arith.constant 0 : index
    %c0_58 = arith.constant 0 : index
    %56 = vector.load %arg12[%c0_57, %c0_58] : memref<8x128xf32, #tpu.memory_space<vmem>>, vector<8x128xf32>
    %cst_59 = arith.constant dense<0.000000e+00> : vector<1x128xf32>
    %57 = tpu.matmul %53, %56, %cst_59 {dimension_numbers = #tpu.dot_dimension_numbers<[1], [0], [0], [1], [0, 0, 1, 1], [], []>} : vector<1x8xf32>, vector<8x128xf32>, vector<1x128xf32> -> vector<1x128xf32>
    %58 = vector.broadcast %55 : vector<1x128xf32> to vector<32x128xf32>
    %59 = arith.mulf %28, %58 : vector<32x128xf32>
    %60 = vector.broadcast %57 : vector<1x128xf32> to vector<32x128xf32>
    %61 = arith.addf %59, %60 : vector<32x128xf32>
    %cst_60 = arith.constant 0.000000e+00 : f32
    %62 = vector.broadcast %cst_60 : f32 to vector<32x128xf32>
    %63 = arith.cmpf oge, %61, %62 : vector<32x128xf32>
    %cst_61 = arith.constant 0.00999999977 : f32
    %64 = vector.broadcast %cst_61 : f32 to vector<32x128xf32>
    %65 = arith.mulf %64, %61 : vector<32x128xf32>
    %66 = arith.select %63, %61, %65 : vector<32x128xi1>, vector<32x128xf32>
    %67 = vector.shape_cast %66 : vector<32x128xf32> to vector<2x16x128xf32>
    %c0_62 = arith.constant 0 : index
    %c8_63 = arith.constant 8 : index
    %c0_64 = arith.constant 0 : index
    %68 = vector.load %arg15[%c0_62, %c8_63, %c0_64] : memref<2x25x128xf32, #tpu.memory_space<vmem>>, vector<2x16x128xf32>
    tpu.vector_store %arg15[%c0_62, %c8_63, %c0_64], %67 {strides = array<i32>} : memref<2x25x128xf32, #tpu.memory_space<vmem>>, vector<2x16x128xf32>,
    %cst_65 = arith.constant 0.000000e+00 : f32
    %69 = vector.broadcast %cst_65 : f32 to vector<32x128xf32>
    %c0_66 = arith.constant 0 : index
    %c7_67 = arith.constant 7 : index
    %c0_68 = arith.constant 0 : index
    %70 = vector.load %arg15[%c0_66, %c7_67, %c0_68] : memref<2x25x128xf32, #tpu.memory_space<vmem>>, vector<2x16x128xf32>
    %71 = vector.shape_cast %70 : vector<2x16x128xf32> to vector<32x128xf32>
    %c0_69 = arith.constant 0 : index
    %c0_70 = arith.constant 0 : index
    %c0_71 = arith.constant 0 : index
    %72 = vector.load %arg5[%c0_69, %c0_70, %c0_71] : memref<3x128x128xf32, #tpu.memory_space<vmem>>, vector<1x128x128xf32>
    %73 = vector.shape_cast %72 : vector<1x128x128xf32> to vector<128x128xf32>
    %cst_72 = arith.constant dense<0.000000e+00> : vector<32x128xf32>
    %74 = tpu.matmul %71, %73, %cst_72 {dimension_numbers = #tpu.dot_dimension_numbers<[1], [0], [0], [1], [0, 0, 1, 1], [], []>} : vector<32x128xf32>, vector<128x128xf32>, vector<32x128xf32> -> vector<32x128xf32>
    %75 = arith.addf %69, %74 : vector<32x128xf32>
    %c0_73 = arith.constant 0 : index
    %c8_74 = arith.constant 8 : index
    %c0_75 = arith.constant 0 : index
    %76 = vector.load %arg15[%c0_73, %c8_74, %c0_75] : memref<2x25x128xf32, #tpu.memory_space<vmem>>, vector<2x16x128xf32>
    %77 = vector.shape_cast %76 : vector<2x16x128xf32> to vector<32x128xf32>
    %c1_76 = arith.constant 1 : index
    %c0_77 = arith.constant 0 : index
    %c0_78 = arith.constant 0 : index
    %78 = vector.load %arg5[%c1_76, %c0_77, %c0_78] : memref<3x128x128xf32, #tpu.memory_space<vmem>>, vector<1x128x128xf32>
    %79 = vector.shape_cast %78 : vector<1x128x128xf32> to vector<128x128xf32>
    %cst_79 = arith.constant dense<0.000000e+00> : vector<32x128xf32>
    %80 = tpu.matmul %77, %79, %cst_79 {dimension_numbers = #tpu.dot_dimension_numbers<[1], [0], [0], [1], [0, 0, 1, 1], [], []>} : vector<32x128xf32>, vector<128x128xf32>, vector<32x128xf32> -> vector<32x128xf32>
    %81 = arith.addf %75, %80 : vector<32x128xf32>
    %c0_80 = arith.constant 0 : index
    %c9_81 = arith.constant 9 : index
    %c0_82 = arith.constant 0 : index
    %82 = vector.load %arg15[%c0_80, %c9_81, %c0_82] : memref<2x25x128xf32, #tpu.memory_space<vmem>>, vector<2x16x128xf32>
    %83 = vector.shape_cast %82 : vector<2x16x128xf32> to vector<32x128xf32>
    %c2_83 = arith.constant 2 : index
    %c0_84 = arith.constant 0 : index
    %c0_85 = arith.constant 0 : index
    %84 = vector.load %arg5[%c2_83, %c0_84, %c0_85] : memref<3x128x128xf32, #tpu.memory_space<vmem>>, vector<1x128x128xf32>
    %85 = vector.shape_cast %84 : vector<1x128x128xf32> to vector<128x128xf32>
    %cst_86 = arith.constant dense<0.000000e+00> : vector<32x128xf32>
    %86 = tpu.matmul %83, %85, %cst_86 {dimension_numbers = #tpu.dot_dimension_numbers<[1], [0], [0], [1], [0, 0, 1, 1], [], []>} : vector<32x128xf32>, vector<128x128xf32>, vector<32x128xf32> -> vector<32x128xf32>
    %87 = arith.addf %81, %86 : vector<32x128xf32>
    %cst_87 = arith.constant dense<0.000000e+00> : vector<128xf32>
    %88 = vector.multi_reduction <add>, %87, %cst_87 [0] : vector<32x128xf32> to vector<128xf32>
    %89 = vector.shape_cast %88 : vector<128xf32> to vector<1x128xf32>
    %c0_88 = arith.constant 0 : index
    %c0_89 = arith.constant 0 : index
    %90 = vector.load %arg11[%c0_88, %c0_89] : memref<128x8xf32, #tpu.memory_space<vmem>>, vector<128x8xf32>
    %cst_90 = arith.constant dense<0.000000e+00> : vector<1x8xf32>
    %91 = tpu.matmul %89, %90, %cst_90 {dimension_numbers = #tpu.dot_dimension_numbers<[1], [0], [0], [1], [0, 0, 1, 1], [], []>} : vector<1x128xf32>, vector<128x8xf32>, vector<1x8xf32> -> vector<1x8xf32>
    %cst_91 = arith.constant 0.001953125 : f32
    %92 = vector.broadcast %cst_91 : f32 to vector<1x8xf32>
    %93 = arith.mulf %91, %92 : vector<1x8xf32>
    %c0_92 = arith.constant 0 : index
    %c0_93 = arith.constant 0 : index
    %94 = vector.load %arg12[%c0_92, %c0_93] : memref<8x128xf32, #tpu.memory_space<vmem>>, vector<8x128xf32>
    %cst_94 = arith.constant dense<0.000000e+00> : vector<1x128xf32>
    %95 = tpu.matmul %93, %94, %cst_94 {dimension_numbers = #tpu.dot_dimension_numbers<[1], [0], [0], [1], [0, 0, 1, 1], [], []>} : vector<1x8xf32>, vector<8x128xf32>, vector<1x128xf32> -> vector<1x128xf32>
    %96 = vector.broadcast %95 : vector<1x128xf32> to vector<32x128xf32>
    %97 = arith.subf %87, %96 : vector<32x128xf32>
    %98 = arith.mulf %97, %97 : vector<32x128xf32>
    %cst_95 = arith.constant dense<0.000000e+00> : vector<128xf32>
    %99 = vector.multi_reduction <add>, %98, %cst_95 [0] : vector<32x128xf32> to vector<128xf32>
    %100 = vector.shape_cast %99 : vector<128xf32> to vector<1x128xf32>
    %c0_96 = arith.constant 0 : index
    %c0_97 = arith.constant 0 : index
    %101 = vector.load %arg11[%c0_96, %c0_97] : memref<128x8xf32, #tpu.memory_space<vmem>>, vector<128x8xf32>
    %cst_98 = arith.constant dense<0.000000e+00> : vector<1x8xf32>
    %102 = tpu.matmul %100, %101, %cst_98 {dimension_numbers = #tpu.dot_dimension_numbers<[1], [0], [0], [1], [0, 0, 1, 1], [], []>} : vector<1x128xf32>, vector<128x8xf32>, vector<1x8xf32> -> vector<1x8xf32>
    %cst_99 = arith.constant 0.001953125 : f32
    %103 = vector.broadcast %cst_99 : f32 to vector<1x8xf32>
    %104 = arith.mulf %102, %103 : vector<1x8xf32>
    %c0_100 = arith.constant 0 : index
    %c0_101 = arith.constant 0 : index
    %105 = vector.load %arg6[%c0_100, %c0_101] : memref<1x8xf32, #tpu.memory_space<vmem>>, vector<1x8xf32>
    %cst_102 = arith.constant 9.99999974E-6 : f32
    %106 = vector.broadcast %cst_102 : f32 to vector<1x8xf32>
    %107 = arith.addf %104, %106 : vector<1x8xf32>
    %108 = math.rsqrt %107 : vector<1x8xf32>
    %109 = arith.mulf %105, %108 : vector<1x8xf32>
    %c0_103 = arith.constant 0 : index
    %c0_104 = arith.constant 0 : index
    %110 = vector.load %arg7[%c0_103, %c0_104] : memref<1x8xf32, #tpu.memory_space<vmem>>, vector<1x8xf32>
    %111 = arith.mulf %93, %109 : vector<1x8xf32>
    %112 = arith.subf %110, %111 : vector<1x8xf32>
    %c0_105 = arith.constant 0 : index
    %c0_106 = arith.constant 0 : index
    %113 = vector.load %arg12[%c0_105, %c0_106] : memref<8x128xf32, #tpu.memory_space<vmem>>, vector<8x128xf32>
    %cst_107 = arith.constant dense<0.000000e+00> : vector<1x128xf32>
    %114 = tpu.matmul %109, %113, %cst_107 {dimension_numbers = #tpu.dot_dimension_numbers<[1], [0], [0], [1], [0, 0, 1, 1], [], []>} : vector<1x8xf32>, vector<8x128xf32>, vector<1x128xf32> -> vector<1x128xf32>
    %c0_108 = arith.constant 0 : index
    %c0_109 = arith.constant 0 : index
    %115 = vector.load %arg12[%c0_108, %c0_109] : memref<8x128xf32, #tpu.memory_space<vmem>>, vector<8x128xf32>
    %cst_110 = arith.constant dense<0.000000e+00> : vector<1x128xf32>
    %116 = tpu.matmul %112, %115, %cst_110 {dimension_numbers = #tpu.dot_dimension_numbers<[1], [0], [0], [1], [0, 0, 1, 1], [], []>} : vector<1x8xf32>, vector<8x128xf32>, vector<1x128xf32> -> vector<1x128xf32>
    %117 = vector.broadcast %114 : vector<1x128xf32> to vector<32x128xf32>
    %118 = arith.mulf %87, %117 : vector<32x128xf32>
    %119 = vector.broadcast %116 : vector<1x128xf32> to vector<32x128xf32>
    %120 = arith.addf %118, %119 : vector<32x128xf32>
    %cst_111 = arith.constant 0.000000e+00 : f32
    %121 = vector.broadcast %cst_111 : f32 to vector<32x128xf32>
    %122 = arith.cmpf oge, %120, %121 : vector<32x128xf32>
    %cst_112 = arith.constant 0.00999999977 : f32
    %123 = vector.broadcast %cst_112 : f32 to vector<32x128xf32>
    %124 = arith.mulf %123, %120 : vector<32x128xf32>
    %125 = arith.select %122, %120, %124 : vector<32x128xi1>, vector<32x128xf32>
    %126 = vector.shape_cast %125 : vector<32x128xf32> to vector<2x16x128xf32>
    %c0_113 = arith.constant 0 : index
    %c8_114 = arith.constant 8 : index
    %c0_115 = arith.constant 0 : index
    %127 = vector.load %arg15[%c0_113, %c8_114, %c0_115] : memref<2x25x128xf32, #tpu.memory_space<vmem>>, vector<2x16x128xf32>
    tpu.vector_store %arg15[%c0_113, %c8_114, %c0_115], %126 {strides = array<i32>} : memref<2x25x128xf32, #tpu.memory_space<vmem>>, vector<2x16x128xf32>,
    %cst_116 = arith.constant 0.000000e+00 : f32
    %128 = vector.broadcast %cst_116 : f32 to vector<32x128xf32>
    %c0_117 = arith.constant 0 : index
    %c7_118 = arith.constant 7 : index
    %c0_119 = arith.constant 0 : index
    %129 = vector.load %arg15[%c0_117, %c7_118, %c0_119] : memref<2x25x128xf32, #tpu.memory_space<vmem>>, vector<2x16x128xf32>
    %130 = vector.shape_cast %129 : vector<2x16x128xf32> to vector<32x128xf32>
    %c0_120 = arith.constant 0 : index
    %c0_121 = arith.constant 0 : index
    %c0_122 = arith.constant 0 : index
    %131 = vector.load %arg8[%c0_120, %c0_121, %c0_122] : memref<3x128x128xf32, #tpu.memory_space<vmem>>, vector<1x128x128xf32>
    %132 = vector.shape_cast %131 : vector<1x128x128xf32> to vector<128x128xf32>
    %cst_123 = arith.constant dense<0.000000e+00> : vector<32x128xf32>
    %133 = tpu.matmul %130, %132, %cst_123 {dimension_numbers = #tpu.dot_dimension_numbers<[1], [0], [0], [1], [0, 0, 1, 1], [], []>} : vector<32x128xf32>, vector<128x128xf32>, vector<32x128xf32> -> vector<32x128xf32>
    %134 = arith.addf %128, %133 : vector<32x128xf32>
    %c0_124 = arith.constant 0 : index
    %c8_125 = arith.constant 8 : index
    %c0_126 = arith.constant 0 : index
    %135 = vector.load %arg15[%c0_124, %c8_125, %c0_126] : memref<2x25x128xf32, #tpu.memory_space<vmem>>, vector<2x16x128xf32>
    %136 = vector.shape_cast %135 : vector<2x16x128xf32> to vector<32x128xf32>
    %c1_127 = arith.constant 1 : index
    %c0_128 = arith.constant 0 : index
    %c0_129 = arith.constant 0 : index
    %137 = vector.load %arg8[%c1_127, %c0_128, %c0_129] : memref<3x128x128xf32, #tpu.memory_space<vmem>>, vector<1x128x128xf32>
    %138 = vector.shape_cast %137 : vector<1x128x128xf32> to vector<128x128xf32>
    %cst_130 = arith.constant dense<0.000000e+00> : vector<32x128xf32>
    %139 = tpu.matmul %136, %138, %cst_130 {dimension_numbers = #tpu.dot_dimension_numbers<[1], [0], [0], [1], [0, 0, 1, 1], [], []>} : vector<32x128xf32>, vector<128x128xf32>, vector<32x128xf32> -> vector<32x128xf32>
    %140 = arith.addf %134, %139 : vector<32x128xf32>
    %c0_131 = arith.constant 0 : index
    %c9_132 = arith.constant 9 : index
    %c0_133 = arith.constant 0 : index
    %141 = vector.load %arg15[%c0_131, %c9_132, %c0_133] : memref<2x25x128xf32, #tpu.memory_space<vmem>>, vector<2x16x128xf32>
    %142 = vector.shape_cast %141 : vector<2x16x128xf32> to vector<32x128xf32>
    %c2_134 = arith.constant 2 : index
    %c0_135 = arith.constant 0 : index
    %c0_136 = arith.constant 0 : index
    %143 = vector.load %arg8[%c2_134, %c0_135, %c0_136] : memref<3x128x128xf32, #tpu.memory_space<vmem>>, vector<1x128x128xf32>
    %144 = vector.shape_cast %143 : vector<1x128x128xf32> to vector<128x128xf32>
    %cst_137 = arith.constant dense<0.000000e+00> : vector<32x128xf32>
    %145 = tpu.matmul %142, %144, %cst_137 {dimension_numbers = #tpu.dot_dimension_numbers<[1], [0], [0], [1], [0, 0, 1, 1], [], []>} : vector<32x128xf32>, vector<128x128xf32>, vector<32x128xf32> -> vector<32x128xf32>
    %146 = arith.addf %140, %145 : vector<32x128xf32>
    %cst_138 = arith.constant dense<0.000000e+00> : vector<128xf32>
    %147 = vector.multi_reduction <add>, %146, %cst_138 [0] : vector<32x128xf32> to vector<128xf32>
    %148 = vector.shape_cast %147 : vector<128xf32> to vector<1x128xf32>
    %c0_139 = arith.constant 0 : index
    %c0_140 = arith.constant 0 : index
    %149 = vector.load %arg11[%c0_139, %c0_140] : memref<128x8xf32, #tpu.memory_space<vmem>>, vector<128x8xf32>
    %cst_141 = arith.constant dense<0.000000e+00> : vector<1x8xf32>
    %150 = tpu.matmul %148, %149, %cst_141 {dimension_numbers = #tpu.dot_dimension_numbers<[1], [0], [0], [1], [0, 0, 1, 1], [], []>} : vector<1x128xf32>, vector<128x8xf32>, vector<1x8xf32> -> vector<1x8xf32>
    %cst_142 = arith.constant 0.001953125 : f32
    %151 = vector.broadcast %cst_142 : f32 to vector<1x8xf32>
    %152 = arith.mulf %150, %151 : vector<1x8xf32>
    %c0_143 = arith.constant 0 : index
    %c0_144 = arith.constant 0 : index
    %153 = vector.load %arg12[%c0_143, %c0_144] : memref<8x128xf32, #tpu.memory_space<vmem>>, vector<8x128xf32>
    %cst_145 = arith.constant dense<0.000000e+00> : vector<1x128xf32>
    %154 = tpu.matmul %152, %153, %cst_145 {dimension_numbers = #tpu.dot_dimension_numbers<[1], [0], [0], [1], [0, 0, 1, 1], [], []>} : vector<1x8xf32>, vector<8x128xf32>, vector<1x128xf32> -> vector<1x128xf32>
    %155 = vector.broadcast %154 : vector<1x128xf32> to vector<32x128xf32>
    %156 = arith.subf %146, %155 : vector<32x128xf32>
    %157 = arith.mulf %156, %156 : vector<32x128xf32>
    %cst_146 = arith.constant dense<0.000000e+00> : vector<128xf32>
    %158 = vector.multi_reduction <add>, %157, %cst_146 [0] : vector<32x128xf32> to vector<128xf32>
    %159 = vector.shape_cast %158 : vector<128xf32> to vector<1x128xf32>
    %c0_147 = arith.constant 0 : index
    %c0_148 = arith.constant 0 : index
    %160 = vector.load %arg11[%c0_147, %c0_148] : memref<128x8xf32, #tpu.memory_space<vmem>>, vector<128x8xf32>
    %cst_149 = arith.constant dense<0.000000e+00> : vector<1x8xf32>
    %161 = tpu.matmul %159, %160, %cst_149 {dimension_numbers = #tpu.dot_dimension_numbers<[1], [0], [0], [1], [0, 0, 1, 1], [], []>} : vector<1x128xf32>, vector<128x8xf32>, vector<1x8xf32> -> vector<1x8xf32>
    %cst_150 = arith.constant 0.001953125 : f32
    %162 = vector.broadcast %cst_150 : f32 to vector<1x8xf32>
    %163 = arith.mulf %161, %162 : vector<1x8xf32>
    %c0_151 = arith.constant 0 : index
    %c0_152 = arith.constant 0 : index
    %164 = vector.load %arg9[%c0_151, %c0_152] : memref<1x8xf32, #tpu.memory_space<vmem>>, vector<1x8xf32>
    %cst_153 = arith.constant 9.99999974E-6 : f32
    %165 = vector.broadcast %cst_153 : f32 to vector<1x8xf32>
    %166 = arith.addf %163, %165 : vector<1x8xf32>
    %167 = math.rsqrt %166 : vector<1x8xf32>
    %168 = arith.mulf %164, %167 : vector<1x8xf32>
    %c0_154 = arith.constant 0 : index
    %c0_155 = arith.constant 0 : index
    %169 = vector.load %arg10[%c0_154, %c0_155] : memref<1x8xf32, #tpu.memory_space<vmem>>, vector<1x8xf32>
    %170 = arith.mulf %152, %168 : vector<1x8xf32>
    %171 = arith.subf %169, %170 : vector<1x8xf32>
    %c0_156 = arith.constant 0 : index
    %c0_157 = arith.constant 0 : index
    %172 = vector.load %arg12[%c0_156, %c0_157] : memref<8x128xf32, #tpu.memory_space<vmem>>, vector<8x128xf32>
    %cst_158 = arith.constant dense<0.000000e+00> : vector<1x128xf32>
    %173 = tpu.matmul %168, %172, %cst_158 {dimension_numbers = #tpu.dot_dimension_numbers<[1], [0], [0], [1], [0, 0, 1, 1], [], []>} : vector<1x8xf32>, vector<8x128xf32>, vector<1x128xf32> -> vector<1x128xf32>
    %c0_159 = arith.constant 0 : index
    %c0_160 = arith.constant 0 : index
    %174 = vector.load %arg12[%c0_159, %c0_160] : memref<8x128xf32, #tpu.memory_space<vmem>>, vector<8x128xf32>
    %cst_161 = arith.constant dense<0.000000e+00> : vector<1x128xf32>
    %175 = tpu.matmul %171, %174, %cst_161 {dimension_numbers = #tpu.dot_dimension_numbers<[1], [0], [0], [1], [0, 0, 1, 1], [], []>} : vector<1x8xf32>, vector<8x128xf32>, vector<1x128xf32> -> vector<1x128xf32>
    %176 = vector.broadcast %173 : vector<1x128xf32> to vector<32x128xf32>
    %177 = arith.mulf %146, %176 : vector<32x128xf32>
    %178 = vector.broadcast %175 : vector<1x128xf32> to vector<32x128xf32>
    %179 = arith.addf %177, %178 : vector<32x128xf32>
    %180 = vector.shape_cast %179 : vector<32x128xf32> to vector<2x16x128xf32>
    %c0_162 = arith.constant 0 : index
    %c0_163 = arith.constant 0 : index
    %c0_164 = arith.constant 0 : index
    %181 = vector.load %arg13[%c0_162, %c0_163, %c0_164] : memref<2x16x128xf32, #tpu.memory_space<vmem>>, vector<2x16x128xf32>
    tpu.vector_store %arg13[%c0_162, %c0_163, %c0_164], %180 {strides = array<i32>} : memref<2x16x128xf32, #tpu.memory_space<vmem>>, vector<2x16x128xf32>,
    return
  }
  func.func @transform_0(%arg0: i32) -> (i32, i32, i32) {
    %c0_i32 = arith.constant 0 : i32
    %c0_i32_0 = arith.constant 0 : i32
    %c0_i32_1 = arith.constant 0 : i32
    %c0_i32_2 = arith.constant 0 : i32
    return %c0_i32, %c0_i32_0, %c0_i32_1 : i32, i32, i32
  }
  func.func @transform_1(%arg0: i32) -> (i32, i32, i32) {
    %c0_i32 = arith.constant 0 : i32
    %c0_i32_0 = arith.constant 0 : i32
    %c0_i32_1 = arith.constant 0 : i32
    %c0_i32_2 = arith.constant 0 : i32
    return %c0_i32, %c0_i32_0, %c0_i32_1 : i32, i32, i32
  }
  func.func @transform_2(%arg0: i32) -> (i32, i32) {
    %c0_i32 = arith.constant 0 : i32
    %c0_i32_0 = arith.constant 0 : i32
    %c0_i32_1 = arith.constant 0 : i32
    return %c0_i32, %c0_i32_0 : i32, i32
  }
  func.func @transform_3(%arg0: i32) -> (i32, i32) {
    %c0_i32 = arith.constant 0 : i32
    %c0_i32_0 = arith.constant 0 : i32
    %c0_i32_1 = arith.constant 0 : i32
    return %c0_i32, %c0_i32_0 : i32, i32
  }
  func.func @transform_4(%arg0: i32) -> (i32, i32, i32) {
    %c0_i32 = arith.constant 0 : i32
    %c0_i32_0 = arith.constant 0 : i32
    %c0_i32_1 = arith.constant 0 : i32
    %c0_i32_2 = arith.constant 0 : i32
    return %c0_i32, %c0_i32_0, %c0_i32_1 : i32, i32, i32
  }
  func.func @transform_5(%arg0: i32) -> (i32, i32) {
    %c0_i32 = arith.constant 0 : i32
    %c0_i32_0 = arith.constant 0 : i32
    %c0_i32_1 = arith.constant 0 : i32
    return %c0_i32, %c0_i32_0 : i32, i32
  }
  func.func @transform_6(%arg0: i32) -> (i32, i32) {
    %c0_i32 = arith.constant 0 : i32
    %c0_i32_0 = arith.constant 0 : i32
    %c0_i32_1 = arith.constant 0 : i32
    return %c0_i32, %c0_i32_0 : i32, i32
  }
  func.func @transform_7(%arg0: i32) -> (i32, i32, i32) {
    %c0_i32 = arith.constant 0 : i32
    %c0_i32_0 = arith.constant 0 : i32
    %c0_i32_1 = arith.constant 0 : i32
    %c0_i32_2 = arith.constant 0 : i32
    return %c0_i32, %c0_i32_0, %c0_i32_1 : i32, i32, i32
  }
  func.func @transform_8(%arg0: i32) -> (i32, i32) {
    %c0_i32 = arith.constant 0 : i32
    %c0_i32_0 = arith.constant 0 : i32
    %c0_i32_1 = arith.constant 0 : i32
    return %c0_i32, %c0_i32_0 : i32, i32
  }
  func.func @transform_9(%arg0: i32) -> (i32, i32) {
    %c0_i32 = arith.constant 0 : i32
    %c0_i32_0 = arith.constant 0 : i32
    %c0_i32_1 = arith.constant 0 : i32
    return %c0_i32, %c0_i32_0 : i32, i32
  }
  func.func @transform_10(%arg0: i32) -> (i32, i32) {
    %c0_i32 = arith.constant 0 : i32
    %c0_i32_0 = arith.constant 0 : i32
    %c0_i32_1 = arith.constant 0 : i32
    return %c0_i32, %c0_i32_0 : i32, i32
  }
  func.func @transform_11(%arg0: i32) -> (i32, i32) {
    %c0_i32 = arith.constant 0 : i32
    %c0_i32_0 = arith.constant 0 : i32
    %c0_i32_1 = arith.constant 0 : i32
    return %c0_i32, %c0_i32_0 : i32, i32
  }
  func.func @transform_12(%arg0: i32) -> (i32, i32, i32) {
    %c0_i32 = arith.constant 0 : i32
    %c0_i32_0 = arith.constant 0 : i32
    %c0_i32_1 = arith.constant 0 : i32
    %c0_i32_2 = arith.constant 0 : i32
    return %c0_i32, %c0_i32_0, %c0_i32_1 : i32, i32, i32
  }
}

</mosaic_0001>

<bundles_post_ra>
// kernel: tile.9
= control target key start
LH: loop header
LB: loop body
LE: loop exit
PB: predicated region body
PF: predicated region fallthrough
CT: control target
= control target key end

     0   :  { %vm6_vm0 = vcmask 1043458   ;;  %vm10_vm1 = vcmask 1045508   ;;  %vm14_vm2 = vcmask 1047558   ;;  %s19_s6 = smov 3  ;;  %s22_s7 = smov 12  ;;  %vm16_vm3 = vcmask 64512   ;;  %s736_s0 = inlined_call_operand.vmem [shape: f32[16,8,8], index: 0, kind: input, shape index: {}]   ;;  %s737_s1 = inlined_call_operand.vmem [shape: f32[128,8], index: 1, kind: output, shape index: {}]  }
   0x1   :  { %v348_v0 = vld [vmem:[%s736_s0 + $0xf] ss:$16 sm:%s19_s6]   ;;  %s27_s12 = smov 48  ;;  %s32_s13 = smov 192  ;;  %vm38_vm4 = vcmask 1048512   ;;  %vm60_vm5 = vcmask 982912  }
   0x2   :  { %v349_v1 = vld [vmem:[%s736_s0 + $0xf] ss:$16 sm:%s22_s7]   ;;  %s63_s18 = smov 3  ;;  %s66_s21 = smov 12  ;;  %vm82_vm6 = vcmask 917312   ;;  %vm104_vm7 = vcmask 851712  }
   0x3   :  { %v25_v2 = vsel %vm6_vm0, %v349_v1, %v348_v0  ;;  %v350_v3 = vld [vmem:[%s736_s0 + $0xf] ss:$16 sm:%s27_s12]   ;;  %v356_v6 = vld [vmem:[%s736_s0 + $0xd] ss:$16 sm:%s63_s18]   ;;  %s71_s22 = smov 48  ;;  %s76_s27 = smov 192 }
   0x4   :  { %v351_v4 = vld [vmem:[%s736_s0 + $0xf] ss:$16 sm:%s32_s13]   ;;  %v30_v5 = vsel %vm10_vm1, %v350_v3, %v25_v2  ;;  %v357_v8 = vld [vmem:[%s736_s0 + $0xd] ss:$16 sm:%s66_s21]   ;;  %s423_s28 = smov 120   ;;  %s41_s2 = smov 3 }
   0x5   :  { %v35_v7 = vsel %vm14_vm2, %v351_v4, %v30_v5  ;;  %v358_v9 = vld [vmem:[%s736_s0 + $0xd] ss:$16 sm:%s71_s22]   ;;  %v69_v10 = vsel %vm6_vm0, %v357_v8, %v356_v6  ;;  %s44_s3 = smov 12  ;;  %v352_v13 = vld [vmem:[%s736_s0 + $0xe] ss:$16 sm:%s41_s2]   ;;  %s49_s8 = smov 48 }
   0x6   :  { %36 = vrot.lane.b32.xlu0 %v35_v7, %s423_s28  ;;  %v359_v11 = vld [vmem:[%s736_s0 + $0xd] ss:$16 sm:%s76_s27]   ;;  %v74_v12 = vsel %vm10_vm1, %v358_v9, %v69_v10  ;;  %s54_s9 = smov 192  ;;  %s85_s14 = smov 3  ;;  %vm126_vm8 = vcmask 786112   ;;  %vm148_vm9 = vcmask 720512  }
   0x7   :  { %v353_v14 = vld [vmem:[%s736_s0 + $0xe] ss:$16 sm:%s44_s3]   ;;  %v79_v15 = vsel %vm14_vm2, %v359_v11, %v74_v12  ;;  %s424_s15 = smov 104   ;;  %v360_v20 = vld [vmem:[%s736_s0 + $0xc] ss:$16 sm:%s85_s14]   ;;  %s88_s18 = smov 12 }
   0x8   :  { %v47_v16 = vsel %vm6_vm0, %v353_v14, %v352_v13  ;;  %v354_v17 = vld [vmem:[%s736_s0 + $0xe] ss:$16 sm:%s49_s8]   ;;  %80 = vrot.lane.b32.xlu1 %v79_v15, %s424_s15  ;;  %s93_s19 = smov 48  ;;  %s98_s24 = smov 192  ;;  %vm170_vm10 = vcmask 654912   ;;  %vm192_vm11 = vcmask 589312  }
   0x9   :  { %v355_v18 = vld [vmem:[%s736_s0 + $0xe] ss:$16 sm:%s54_s9]   ;;  %v52_v19 = vsel %vm10_vm1, %v354_v17, %v47_v16  ;;  %v361_v22 = vld [vmem:[%s736_s0 + $0xc] ss:$16 sm:%s88_s18]   ;;  %s425_s25 = smov 112   ;;  %s107_s28 = smov 3 }
   0xa   :  { %v57_v21 = vsel %vm14_vm2, %v355_v18, %v52_v19  ;;  %v362_v23 = vld [vmem:[%s736_s0 + $0xc] ss:$16 sm:%s93_s19]   ;;  %v91_v24 = vsel %vm6_vm0, %v361_v22, %v360_v20  ;;  %s110_s29 = smov 12  ;;  %v364_v27 = vld [vmem:[%s736_s0 + $0xb] ss:$16 sm:%s107_s28]   ;;  %s115_s5 = smov 48 }
   0xb   :  { %58 = vrot.lane.b32.xlu0 %v57_v21, %s425_s25  ;;  %v363_v25 = vld [vmem:[%s736_s0 + $0xc] ss:$16 sm:%s98_s24]   ;;  %v96_v26 = vsel %vm10_vm1, %v362_v23, %v91_v24  ;;  %s120_s6 = smov 192  ;;  %s129_s11 = smov 3  ;;  %vm214_vm12 = vcmask 523712   ;;  %vm236_vm13 = vcmask 458112  }
   0xc   :  { %v365_v28 = vld [vmem:[%s736_s0 + $0xb] ss:$16 sm:%s110_s29]   ;;  %v101_v29 = vsel %vm14_vm2, %v363_v25, %v96_v26  ;;  %s426_s12 = smov 96   ;;  %v368_v34 = vld [vmem:[%s736_s0 + $0xa] ss:$16 sm:%s129_s11]   ;;  %s132_s15 = smov 12 }
   0xd   :  { %v113_v30 = vsel %vm6_vm0, %v365_v28, %v364_v27  ;;  %v366_v31 = vld [vmem:[%s736_s0 + $0xb] ss:$16 sm:%s115_s5]   ;;  %102 = vrot.lane.b32.xlu1 %v101_v29, %s426_s12  ;;  %s137_s16 = smov 48  ;;  %s142_s21 = smov 192  ;;  %vm258_vm14 = vcmask 392512   ;;  %vm280_vm15 = vcmask 326912  }
   0xe   :  { %v367_v32 = vld [vmem:[%s736_s0 + $0xb] ss:$16 sm:%s120_s6]   ;;  %v118_v33 = vsel %vm10_vm1, %v366_v31, %v113_v30  ;;  %v369_v36 = vld [vmem:[%s736_s0 + $0xa] ss:$16 sm:%s132_s15]   ;;  %s427_s22 = smov 88   ;;  %s151_s25 = smov 3 }
   0xf   :  { %v123_v35 = vsel %vm14_vm2, %v367_v32, %v118_v33  ;;  %v370_v37 = vld [vmem:[%s736_s0 + $0xa] ss:$16 sm:%s137_s16]   ;;  %v135_v38 = vsel %vm6_vm0, %v369_v36, %v368_v34  ;;  %s154_s26 = smov 12  ;;  %v372_v41 = vld [vmem:[%s736_s0 + $0x9] ss:$16 sm:%s151_s25]   ;;  %s159_s2 = smov 48 }
  0x10   :  { %124 = vrot.lane.b32.xlu0 %v123_v35, %s427_s22  ;;  %v371_v39 = vld [vmem:[%s736_s0 + $0xa] ss:$16 sm:%s142_s21]   ;;  %v140_v40 = vsel %vm10_vm1, %v370_v37, %v135_v38  ;;  %s164_s3 = smov 192  ;;  %s173_s8 = smov 3 }
  0x11   :  { %v373_v42 = vld [vmem:[%s736_s0 + $0x9] ss:$16 sm:%s154_s26]   ;;  %v145_v43 = vsel %vm14_vm2, %v371_v39, %v140_v40  ;;  %s428_s9 = smov 80   ;;  %v376_v48 = vld [vmem:[%s736_s0 + $0x8] ss:$16 sm:%s173_s8]   ;;  %s176_s12 = smov 12 }
  0x12   :  { %v157_v44 = vsel %vm6_vm0, %v373_v42, %v372_v41  ;;  %v374_v45 = vld [vmem:[%s736_s0 + $0x9] ss:$16 sm:%s159_s2]   ;;  %146 = vrot.lane.b32.xlu1 %v145_v43, %s428_s9  ;;  %s181_s13 = smov 48  ;;  %s186_s18 = smov 192 }
  0x13   :  { %v375_v46 = vld [vmem:[%s736_s0 + $0x9] ss:$16 sm:%s164_s3]   ;;  %v162_v47 = vsel %vm10_vm1, %v374_v45, %v157_v44  ;;  %v377_v50 = vld [vmem:[%s736_s0 + $0x8] ss:$16 sm:%s176_s12]   ;;  %s429_s19 = smov 72   ;;  %s195_s22 = smov 3 }
  0x14   :  { %v167_v49 = vsel %vm14_vm2, %v375_v46, %v162_v47  ;;  %v378_v51 = vld [vmem:[%s736_s0 + $0x8] ss:$16 sm:%s181_s13]   ;;  %v179_v52 = vsel %vm6_vm0, %v377_v50, %v376_v48  ;;  %s198_s23 = smov 12  ;;  %v380_v55 = vld [vmem:[%s736_s0 + $0x7] ss:$16 sm:%s195_s22]   ;;  %s203_s28 = smov 48 }
  0x15   :  { %168 = vrot.lane.b32.xlu0 %v167_v49, %s429_s19  ;;  %v379_v53 = vld [vmem:[%s736_s0 + $0x8] ss:$16 sm:%s186_s18]   ;;  %v184_v54 = vsel %vm10_vm1, %v378_v51, %v179_v52  ;;  %s208_s29 = smov 192  ;;  %s217_s5 = smov 3 }
  0x16   :  { %v381_v56 = vld [vmem:[%s736_s0 + $0x7] ss:$16 sm:%s198_s23]   ;;  %v189_v57 = vsel %vm14_vm2, %v379_v53, %v184_v54  ;;  %s430_s6 = smov 64   ;;  %v384_v62 = vld [vmem:[%s736_s0 + $0x6] ss:$16 sm:%s217_s5]   ;;  %s220_s9 = smov 12 }
  0x17   :  { %v201_v58 = vsel %vm6_vm0, %v381_v56, %v380_v55  ;;  %v382_v59 = vld [vmem:[%s736_s0 + $0x7] ss:$16 sm:%s203_s28]   ;;  %190 = vrot.lane.b32.xlu1 %v189_v57, %s430_s6  ;;  %s225_s10 = smov 48  ;;  %s230_s15 = smov 192 }
  0x18   :  { %v383_v60 = vld [vmem:[%s736_s0 + $0x7] ss:$16 sm:%s208_s29]   ;;  %v206_v61 = vsel %vm10_vm1, %v382_v59, %v201_v58  ;;  %v385_v0 = vld [vmem:[%s736_s0 + $0x6] ss:$16 sm:%s220_s9]   ;;  %s431_s16 = smov 56   ;;  %s239_s19 = smov 3 }
  0x19   :  { %v211_v63 = vsel %vm14_vm2, %v383_v60, %v206_v61  ;;  %v386_v1 = vld [vmem:[%s736_s0 + $0x6] ss:$16 sm:%s225_s10]   ;;  %v223_v2 = vsel %vm6_vm0, %v385_v0, %v384_v62  ;;  %s242_s20 = smov 12  ;;  %v388_v5 = vld [vmem:[%s736_s0 + $0x5] ss:$16 sm:%s239_s19]   ;;  %s247_s25 = smov 48 }
  0x1a   :  { %212 = vrot.lane.b32.xlu0 %v211_v63, %s431_s16  ;;  %v387_v3 = vld [vmem:[%s736_s0 + $0x6] ss:$16 sm:%s230_s15]   ;;  %v228_v4 = vsel %vm10_vm1, %v386_v1, %v223_v2  ;;  %s252_s26 = smov 192  ;;  %s261_s2 = smov 3 }
  0x1b   :  { %v389_v6 = vld [vmem:[%s736_s0 + $0x5] ss:$16 sm:%s242_s20]   ;;  %v233_v7 = vsel %vm14_vm2, %v387_v3, %v228_v4  ;;  %s432_s3 = smov 48   ;;  %v392_v12 = vld [vmem:[%s736_s0 + $0x4] ss:$16 sm:%s261_s2]   ;;  %s264_s6 = smov 12 }
  0x1c   :  { %v245_v8 = vsel %vm6_vm0, %v389_v6, %v388_v5  ;;  %v390_v9 = vld [vmem:[%s736_s0 + $0x5] ss:$16 sm:%s247_s25]   ;;  %234 = vrot.lane.b32.xlu1 %v233_v7, %s432_s3  ;;  %s269_s7 = smov 48  ;;  %s274_s12 = smov 192 }
  0x1d   :  { %v391_v10 = vld [vmem:[%s736_s0 + $0x5] ss:$16 sm:%s252_s26]   ;;  %v250_v11 = vsel %vm10_vm1, %v390_v9, %v245_v8  ;;  %v393_v14 = vld [vmem:[%s736_s0 + $0x4] ss:$16 sm:%s264_s6]   ;;  %s433_s13 = smov 40   ;;  %s283_s16 = smov 3 }
  0x1e   :  { %v255_v13 = vsel %vm14_vm2, %v391_v10, %v250_v11  ;;  %v394_v15 = vld [vmem:[%s736_s0 + $0x4] ss:$16 sm:%s269_s7]   ;;  %v267_v16 = vsel %vm6_vm0, %v393_v14, %v392_v12  ;;  %s286_s17 = smov 12  ;;  %v396_v19 = vld [vmem:[%s736_s0 + $0x3] ss:$16 sm:%s283_s16]   ;;  %s291_s22 = smov 48 }
  0x1f   :  { %256 = vrot.lane.b32.xlu0 %v255_v13, %s433_s13  ;;  %v395_v17 = vld [vmem:[%s736_s0 + $0x4] ss:$16 sm:%s274_s12]   ;;  %v272_v18 = vsel %vm10_vm1, %v394_v15, %v267_v16  ;;  %s296_s23 = smov 192  ;;  %s305_s28 = smov 3 }
  0x20   :  { %v397_v20 = vld [vmem:[%s736_s0 + $0x3] ss:$16 sm:%s286_s17]   ;;  %v277_v21 = vsel %vm14_vm2, %v395_v17, %v272_v18  ;;  %s434_s29 = smov 32   ;;  %v400_v26 = vld [vmem:[%s736_s0 + $0x2] ss:$16 sm:%s305_s28]   ;;  %s308_s3 = smov 12 }
  0x21   :  { %v289_v22 = vsel %vm6_vm0, %v397_v20, %v396_v19  ;;  %v398_v23 = vld [vmem:[%s736_s0 + $0x3] ss:$16 sm:%s291_s22]   ;;  %278 = vrot.lane.b32.xlu1 %v277_v21, %s434_s29  ;;  %s313_s4 = smov 48  ;;  %s318_s9 = smov 192 }
  0x22   :  { %v399_v24 = vld [vmem:[%s736_s0 + $0x3] ss:$16 sm:%s296_s23]   ;;  %v294_v25 = vsel %vm10_vm1, %v398_v23, %v289_v22  ;;  %v401_v28 = vld [vmem:[%s736_s0 + $0x2] ss:$16 sm:%s308_s3]   ;;  %s435_s10 = smov 24   ;;  %s327_s13 = smov 3 }
  0x23   :  { %v299_v27 = vsel %vm14_vm2, %v399_v24, %v294_v25  ;;  %v402_v29 = vld [vmem:[%s736_s0 + $0x2] ss:$16 sm:%s313_s4]   ;;  %v311_v30 = vsel %vm6_vm0, %v401_v28, %v400_v26  ;;  %s330_s14 = smov 12  ;;  %v404_v33 = vld [vmem:[%s736_s0 + $0x1] ss:$16 sm:%s327_s13]   ;;  %s335_s19 = smov 48 }
  0x24   :  { %300 = vrot.lane.b32.xlu0 %v299_v27, %s435_s10  ;;  %v403_v31 = vld [vmem:[%s736_s0 + $0x2] ss:$16 sm:%s318_s9]   ;;  %v316_v32 = vsel %vm10_vm1, %v402_v29, %v311_v30  ;;  %s340_s20 = smov 192  ;;  %s2_s25 = smov 3 }
  0x25   :  { %v405_v34 = vld [vmem:[%s736_s0 + $0x1] ss:$16 sm:%s330_s14]   ;;  %v321_v35 = vsel %vm14_vm2, %v403_v31, %v316_v32  ;;  %s436_s26 = smov 16   ;;  %s4_s27 = smov 12  ;;  %v3_v40 = vld [vmem:[%s736_s0] ss:$16 sm:%s2_s25]  }
  0x26   :  { %v333_v36 = vsel %vm6_vm0, %v405_v34, %v404_v33  ;;  %v406_v37 = vld [vmem:[%s736_s0 + $0x1] ss:$16 sm:%s335_s19]   ;;  %322 = vrot.lane.b32.xlu1 %v321_v35, %s436_s26  ;;  %s8_s28 = smov 48  ;;  %s12_s2 = smov 192 }
  0x27   :  { %v407_v38 = vld [vmem:[%s736_s0 + $0x1] ss:$16 sm:%s340_s20]   ;;  %v338_v39 = vsel %vm10_vm1, %v406_v37, %v333_v36  ;;  %v5_v42 = vld [vmem:[%s736_s0] ss:$16 sm:%s4_s27]   ;;  %s437_s7 = smov 8  }
  0x28   :  { %v343_v41 = vsel %vm14_vm2, %v407_v38, %v338_v39  ;;  %v9_v43 = vld [vmem:[%s736_s0] ss:$16 sm:%s8_s28]   ;;  %v7_v44 = vsel %vm6_vm0, %v5_v42, %v3_v40  ;;  %vm302_vm0 = vcmask 261312  }
  0x29   :  { %344 = vrot.lane.b32.xlu0 %v343_v41, %s437_s7  ;;  %v13_v45 = vld [vmem:[%s736_s0] ss:$16 sm:%s12_s2]   ;;  %v11_v46 = vsel %vm10_vm1, %v9_v43, %v7_v44  ;;  %vm324_vm1 = vcmask 195712  }
  0x2a   :  { %v15_v47 = vsel %vm14_vm2, %v13_v45, %v11_v46  ;;  %vm346_vm2 = vcmask 130112  }
  0x2b   :  { %17 = vst.msk [vmem:[%s737_s1] sm:$0xff] %vm16_vm3, %v15_v47  }
  0x78   :  { %v37_v48 = vpop.permute.xlu0 %36  }
  0x79   :  { %39 = vst.msk [vmem:[%s737_s1] sm:$0xff] %vm38_vm4, %v37_v48  }
  0x7a   :  { %v81_v49 = vpop.permute.xlu1 %80  }
  0x7d   :  { %v59_v50 = vpop.permute.xlu0 %58  }
  0x7e   :  { %61 = vst.msk [vmem:[%s737_s1] sm:$0xff] %vm60_vm5, %v59_v50  }
  0x7f   :  { %83 = vst.msk [vmem:[%s737_s1] sm:$0xff] %vm82_vm6, %v81_v49   ;;  %v103_v51 = vpop.permute.xlu1 %102  }
  0x80   :  { %105 = vst.msk [vmem:[%s737_s1] sm:$0xff] %vm104_vm7, %v103_v51  }
  0x82   :  { %v125_v52 = vpop.permute.xlu0 %124  }
  0x83   :  { %127 = vst.msk [vmem:[%s737_s1] sm:$0xff] %vm126_vm8, %v125_v52  }
  0x84   :  { %v147_v53 = vpop.permute.xlu1 %146  }
  0x85   :  { %149 = vst.msk [vmem:[%s737_s1] sm:$0xff] %vm148_vm9, %v147_v53  }
  0x87   :  { %v169_v54 = vpop.permute.xlu0 %168  }
  0x88   :  { %171 = vst.msk [vmem:[%s737_s1] sm:$0xff] %vm170_vm10, %v169_v54  }
  0x89   :  { %v191_v55 = vpop.permute.xlu1 %190  }
  0x8a   :  { %193 = vst.msk [vmem:[%s737_s1] sm:$0xff] %vm192_vm11, %v191_v55  }
  0x8c   :  { %v213_v56 = vpop.permute.xlu0 %212  }
  0x8d   :  { %215 = vst.msk [vmem:[%s737_s1] sm:$0xff] %vm214_vm12, %v213_v56  }
  0x8e   :  { %v235_v57 = vpop.permute.xlu1 %234  }
  0x8f   :  { %237 = vst.msk [vmem:[%s737_s1] sm:$0xff] %vm236_vm13, %v235_v57  }
  0x91   :  { %v257_v58 = vpop.permute.xlu0 %256  }
  0x92   :  { %259 = vst.msk [vmem:[%s737_s1] sm:$0xff] %vm258_vm14, %v257_v58  }
  0x93   :  { %v279_v59 = vpop.permute.xlu1 %278  }
  0x94   :  { %281 = vst.msk [vmem:[%s737_s1] sm:$0xff] %vm280_vm15, %v279_v59  }
  0x96   :  { %v301_v60 = vpop.permute.xlu0 %300  }
  0x97   :  { %303 = vst.msk [vmem:[%s737_s1] sm:$0xff] %vm302_vm0, %v301_v60  }
  0x98   :  { %v323_v61 = vpop.permute.xlu1 %322  }
  0x99   :  { %325 = vst.msk [vmem:[%s737_s1] sm:$0xff] %vm324_vm1, %v323_v61  }
  0x9b   :  { %v345_v62 = vpop.permute.xlu0 %344  }
  0x9c   :  { %347 = vst.msk [vmem:[%s737_s1] sm:$0xff] %vm346_vm2, %v345_v62  }

// kernel: branch3_forward.1
= control target key start
LH: loop header
LB: loop body
LE: loop exit
PB: predicated region body
PF: predicated region fallthrough
CT: control target
= control target key end

     0   :  { %vm41_vm0 = vcmask 516096   ;;  %vm54_vm1 = vcmask 523264   ;;  %v3711_v3 = vmov 0.0   ;;  %v3712_v4 = vmov 0.0|0.0   ;;  %s4551_s1 = inlined_call_operand.vmem [shape: f32[3,64,128], index: 1, kind: input, shape index: {}]   ;;  %s4552_s0 = inlined_call_operand.vmem [shape: f32[2,16,64], index: 0, kind: input, shape index: {}]   ;;  %s4553_s10 = inlined_call_operand.vmem [shape: f32[128,8], index: 10, kind: input, shape index: {}]   ;;  %s4554_s11 = inlined_call_operand.vmem [shape: f32[8,128], index: 11, kind: input, shape index: {}]   ;;  %s4555_s2 = inlined_call_operand.vmem [shape: f32[1,8], index: 2, kind: input, shape index: {}]   ;;  %s4556_s4 = inlined_call_operand.vmem [shape: f32[3,128,128], index: 4, kind: input, shape index: {}]   ;;  %s4557_s3 = inlined_call_operand.vmem [shape: f32[1,8], index: 3, kind: input, shape index: {}]   ;;  %s4558_s5 = inlined_call_operand.vmem [shape: f32[1,8], index: 5, kind: input, shape index: {}]   ;;  %s4559_s7 = inlined_call_operand.vmem [shape: f32[3,128,128], index: 7, kind: input, shape index: {}]   ;;  %s4560_s6 = inlined_call_operand.vmem [shape: f32[1,8], index: 6, kind: input, shape index: {}]   ;;  %s4561_s8 = inlined_call_operand.vmem [shape: f32[1,8], index: 8, kind: input, shape index: {}]   ;;  %s4562_s9 = inlined_call_operand.vmem [shape: f32[1,8], index: 9, kind: input, shape index: {}]   ;;  %s4563_s12 = inlined_call_operand.vmem [shape: f32[2,16,128], index: 12, kind: output, shape index: {}]  }
   0x1   :  { %v2368_v0 = vld [vmem:[%s4551_s1 + $0x40] sm:$0xff]  ;;  %v2369_v1 = vld [vmem:[%s4551_s1 + $0x48] sm:$0xff]  ;;  %v2370_v2 = vld [vmem:[%s4551_s1 + $0x50] sm:$0xff]  ;;  %42 = vst.msk [vmem:[#allocation2 + $0x7] sm:$0x1] %vm41_vm0, %v3711_v3  ;;  %3342 = vmatprep.subr.bf16.mxu1 %v3712_v4  ;;  %vm3713_vm2 = vmmov 0  }
   0x2   :  { %43 = vst.msk [vmem:[#allocation2 + $0x27] sm:$0x1] %vm41_vm0, %v3711_v3  ;;  %44 = vst.msk [vmem:[#allocation2 + $0x18] sm:$0x1] %vm41_vm0, %v3711_v3  ;;  %v3294_v5 = vpack.c.bf16 %v2369_v1, %v2368_v0  ;;  %v2371_v6 = vld [vmem:[%s4551_s1 + $0x58] sm:$0xff]  ;;  %v2372_v8 = vld [vmem:[%s4551_s1 + $0x60] sm:$0xff]  ;;  %2843 = vmatprep.mubr.msk.f32.mxu1 %vm3713_vm2, %v3711_v3 }
   0x3   :  { %45 = vst.msk [vmem:[#allocation2 + $0x38] sm:$0x1] %vm41_vm0, %v3711_v3  ;;  %46 = vst [vmem:[#allocation3 + $0x7] sm:$0x1] %v3711_v3  ;;  %v3298_v7 = vpack.c.bf16 %v2371_v6, %v2370_v2  ;;  %v2373_v9 = vld [vmem:[%s4551_s1 + $0x68] sm:$0xff]  ;;  %v50_v10 = vld [vmem:[%s4552_s0] sm:$0xff] }
   0x4   :  { %47 = vst [vmem:[#allocation3 + $0x27] sm:$0x1] %v3711_v3  ;;  %48 = vst [vmem:[#allocation3 + $0x18] sm:$0x1] %v3711_v3  ;;  %3295 = vmatprep.subr.bf16.mxu0 %v3294_v5  ;;  %v51_v11 = vld [vmem:[%s4552_s0 + $0x8] sm:$0xff]  ;;  %v3302_v12 = vpack.c.bf16 %v2373_v9, %v2372_v8  ;;  %v52_v13 = vld [vmem:[%s4552_s0 + $0x10] sm:$0xff] }
   0x5   :  { %49 = vst [vmem:[#allocation3 + $0x38] sm:$0x1] %v3711_v3  ;;  %55 = vst.msk [vmem:[#allocation2 + $0x8] sm:$0xff] %vm54_vm1, %v50_v10  ;;  %3297 = vmatpush3.bf16.msra.mxu0 %v3294_v5  ;;  %v2374_v14 = vld [vmem:[%s4551_s1 + $0x70] sm:$0xff]  ;;  %v2375_v15 = vld [vmem:[%s4551_s1 + $0x78] sm:$0xff]  ;;  %vm489_vm3 = vcmask 64512  }
   0x6   :  { %56 = vst.msk [vmem:[#allocation2 + $0x10] sm:$0xff] %vm54_vm1, %v51_v11  ;;  %3299 = vmatprep.subr.bf16.mxu0 %v3298_v7  ;;  %57 = vst.msk [vmem:[#allocation2 + $0x28] sm:$0xff] %vm54_vm1, %v52_v13  ;;  %v53_v16 = vld [vmem:[%s4552_s0 + $0x18] sm:$0xff]  ;;  %v3306_v17 = vpack.c.bf16 %v2375_v15, %v2374_v14  ;;  %v63_v18 = vld [vmem:[%s4551_s1] sm:$0xff] }
   0x7   :  { %58 = vst.msk [vmem:[#allocation2 + $0x30] sm:$0xff] %vm54_vm1, %v53_v16  ;;  %v401_v19 = vld [vmem:[%s4553_s10] sm:$0xff]  ;;  %v402_v20 = vld [vmem:[%s4553_s10 + $0x8] sm:$0xff]  ;;  %v403_v24 = vld [vmem:[%s4553_s10 + $0x10] sm:$0xff] }
   0x8   :  { %v64_v22 = vld [vmem:[%s4551_s1 + $0x8] sm:$0xff]  ;;  %v3840_v23 = vpack.c.bf16 %v402_v20, %v401_v19  ;;  %v404_v25 = vld [vmem:[%s4553_s10 + $0x18] sm:$0xff]  ;;  %v65_v27 = vld [vmem:[%s4551_s1 + $0x10] sm:$0xff] }
   0x9   :  { %3301 = vmatpush3.bf16.msra.mxu0 %v3298_v7  ;;  %v3310_v26 = vpack.c.bf16 %v64_v22, %v63_v18  ;;  %v3854_v28 = vpack.c.bf16 %v404_v25, %v403_v24  ;;  %v66_v29 = vld [vmem:[%s4551_s1 + $0x18] sm:$0xff]  ;;  %v405_v30 = vld [vmem:[%s4553_s10 + $0x20] sm:$0xff]  ;;  %v406_v31 = vld [vmem:[%s4553_s10 + $0x28] sm:$0xff] }
   0xa   :  { %3303 = vmatprep.subr.bf16.mxu0 %v3302_v12  ;;  %3344 = vmatpush3.bf16.msra.mxu1 %v3840_v23  ;;  %v3314_v33 = vpack.c.bf16 %v66_v29, %v65_v27  ;;  %v3867_v35 = vpack.c.bf16 %v406_v31, %v405_v30  ;;  %v67_v36 = vld [vmem:[%s4551_s1 + $0x20] sm:$0xff]  ;;  %v68_v37 = vld [vmem:[%s4551_s1 + $0x28] sm:$0xff]  ;;  %v69_v41 = vld [vmem:[%s4551_s1 + $0x30] sm:$0xff] }
   0xb   :  { %3345 = vmatprep.subr.bf16.mxu1 %v3712_v4  ;;  %v3318_v39 = vpack.c.bf16 %v68_v37, %v67_v36  ;;  %v70_v42 = vld [vmem:[%s4551_s1 + $0x38] sm:$0xff]  ;;  %v2384_v44 = vld [vmem:[%s4551_s1 + $0x80] sm:$0xff]  ;;  %v2385_v45 = vld [vmem:[%s4551_s1 + $0x88] sm:$0xff]  ;;  %v563_v36 = vlaneseq }
   0xc   :  { %v71_v21 = vld [vmem:[#allocation2 + $0x8] sm:$0xff]  ;;  %v3322_v43 = vpack.c.bf16 %v70_v42, %v69_v41  ;;  %v3326_v46 = vpack.c.bf16 %v2385_v45, %v2384_v44  ;;  %v2386_v47 = vld [vmem:[%s4551_s1 + $0x90] sm:$0xff]  ;;  %v2387_v48 = vld [vmem:[%s4551_s1 + $0x98] sm:$0xff] }
   0xd   :  { %2761 = vmatprep.mubr.msk.f32.mxu0 %vm54_vm1, %v71_v21  ;;  %3305 = vmatpush3.bf16.msra.mxu0 %v3302_v12  ;;  %v72_v32 = vld [vmem:[#allocation2 + $0x10] sm:$0xff]  ;;  %v73_v34 = vld [vmem:[#allocation2 + $0x28] sm:$0xff]  ;;  %v3330_v50 = vpack.c.bf16 %v2387_v48, %v2386_v47  ;;  %v2388_v52 = vld [vmem:[%s4551_s1 + $0xa0] sm:$0xff]  ;;  %v564_v37 = vshrl.u32 %v563_v36, 7 }
   0xe   :  { %3307 = vmatprep.subr.bf16.mxu0 %v3306_v17  ;;  %3347 = vmatpush3.bf16.msra.mxu1 %v3854_v28  ;;  %v74_v38 = vld [vmem:[#allocation2 + $0x30] sm:$0xff]  ;;  %v59_v40 = vld [vmem:[#allocation2 + $0x7] sm:$0xff]  ;;  %v2391_v58 = vld [vmem:[%s4551_s1 + $0xb8] sm:$0xff] }
   0xf   :  { %3348 = vmatprep.subr.bf16.mxu1 %v3712_v4  ;;  %v60_v49 = vld [vmem:[#allocation2 + $0xf] sm:$0xff]  ;;  %v61_v51 = vld [vmem:[#allocation2 + $0x27] sm:$0xff]  ;;  %v408_v0 = vld [vmem:[%s4553_s10 + $0x38] sm:$0xff] }
  0x10   :  { %v2389_v53 = vld [vmem:[%s4551_s1 + $0xa8] sm:$0xff]  ;;  %v2390_v57 = vld [vmem:[%s4551_s1 + $0xb0] sm:$0xff]  ;;  %v409_v2 = vld [vmem:[%s4553_s10 + $0x40] sm:$0xff] }
  0x11   :  { %3309 = vmatpush3.bf16.msra.mxu0 %v3306_v17  ;;  %v62_v54 = vld [vmem:[#allocation2 + $0x2f] sm:$0xff]  ;;  %v3334_v55 = vpack.c.bf16 %v2389_v53, %v2388_v52  ;;  %v3338_v59 = vpack.c.bf16 %v2391_v58, %v2390_v57  ;;  %v412_v8 = vld [vmem:[%s4553_s10 + $0x58] sm:$0xff]  ;;  %v413_v10 = vld [vmem:[%s4553_s10 + $0x60] sm:$0xff] }
  0x12   :  { %3311 = vmatprep.subr.bf16.mxu0 %v3310_v26  ;;  %3350 = vmatpush3.bf16.msra.mxu1 %v3867_v35  ;;  %v278_v56 = vld [vmem:[#allocation2 + $0x9] sm:$0xff]  ;;  %v279_v60 = vld [vmem:[#allocation2 + $0x11] sm:$0xff]  ;;  %v3976_v16 = vld [vmem:[%s4554_s11] sm:$0xff] }
  0x13   :  { %3351 = vmatprep.subr.bf16.mxu1 %v3712_v4  ;;  %v280_v61 = vld [vmem:[#allocation2 + $0x29] sm:$0xff]  ;;  %v281_v62 = vld [vmem:[#allocation2 + $0x31] sm:$0xff] }
  0x14   :  { %2762 = vmatmul.mubr.msk.f32.vlgmr.msra.gmra.mrb[0].mxu0 %vm54_vm1, %v72_v32  ;;  %v407_v63 = vld [vmem:[%s4553_s10 + $0x30] sm:$0xff]  ;;  %v410_v5 = vld [vmem:[%s4553_s10 + $0x48] sm:$0xff]  ;;  %v416_v14 = vld [vmem:[%s4553_s10 + $0x78] sm:$0xff] }
  0x15   :  { %3313 = vmatpush3.bf16.msra.mxu0 %v3310_v26  ;;  %2764 = vmatprep.mubr.msk.f32.mxu0 %vm54_vm1, %v73_v34  ;;  %v3925_v1 = vpack.c.bf16 %v408_v0, %v407_v63  ;;  %v3935_v6 = vpack.c.bf16 %v410_v5, %v409_v2  ;;  %v411_v7 = vld [vmem:[%s4553_s10 + $0x50] sm:$0xff]  ;;  %v414_v11 = vld [vmem:[%s4553_s10 + $0x68] sm:$0xff]  ;;  %v655_v63 = vld [vmem:[%s4555_s2] sm:$0x1] }
  0x16   :  { %3315 = vmatprep.subr.bf16.mxu0 %v3314_v33  ;;  %v3945_v9 = vpack.c.bf16 %v412_v8, %v411_v7  ;;  %v415_v12 = vld [vmem:[%s4553_s10 + $0x70] sm:$0xff]  ;;  %v3958_v13 = vpack.c.bf16 %v414_v11, %v413_v10  ;;  %v2399_v0 = vld [vmem:[%s4556_s4 + $0x80] sm:$0xff]  ;;  %v2400_v2 = vld [vmem:[%s4556_s4 + $0x88] sm:$0xff] }
  0x17   :  { %3353 = vmatpush3.bf16.msra.mxu1 %v3925_v1  ;;  %v3968_v15 = vpack.c.bf16 %v416_v14, %v415_v12  ;;  %v3390_v8 = vpack.c.bf16 %v2400_v2, %v2399_v0  ;;  %v659_v10 = vld [vmem:[%s4557_s3] sm:$0x1]  ;;  %v2401_v11 = vld [vmem:[%s4556_s4 + $0x90] sm:$0xff]  ;;  %v2402_v12 = vld [vmem:[%s4556_s4 + $0x98] sm:$0xff] }
  0x18   :  { %2765 = vmatmul.mubr.msk.f32.gmra.mrb[2].mxu0 %vm54_vm1, %v74_v38  ;;  %3354 = vmatprep.subr.bf16.mxu1 %v3712_v4  ;;  %v4018_v38 = vsub.s32 0, %v564_v37  ;;  %v2410_v36 = vld [vmem:[%s4556_s4 + $0xd8] sm:$0xff] }
  0x19   :  { %3317 = vmatpush3.bf16.msra.mxu0 %v3314_v33  ;;  %2783 = vmatprep.mubr.msk.f32.mxu0 %vm54_vm1, %v59_v40 }
  0x1a   :  { %3319 = vmatprep.subr.bf16.mxu0 %v3318_v39 }
  0x1b   :  { %3356 = vmatpush3.bf16.msra.mxu1 %v3935_v6 }
  0x1c   :  { %3357 = vmatprep.subr.bf16.mxu1 %v3712_v4 }
  0x1d   :  { %3321 = vmatpush3.bf16.msra.mxu0 %v3318_v39 }
  0x1e   :  { %3323 = vmatprep.subr.bf16.mxu0 %v3322_v43 }
  0x1f   :  { %3359 = vmatpush3.bf16.msra.mxu1 %v3945_v9 }
  0x20   :  { %3360 = vmatprep.subr.bf16.mxu1 %v3712_v4 }
  0x21   :  { %3325 = vmatpush3.bf16.msra.mxu0 %v3322_v43 }
  0x22   :  { %3327 = vmatprep.subr.bf16.mxu0 %v3326_v46 }
  0x23   :  { %3362 = vmatpush3.bf16.msra.mxu1 %v3958_v13 }
  0x24   :  { %2784 = vmatmul.mubr.msk.f32.vlgmr.msra.gmra.mrb[0].mxu0 %vm54_vm1, %v60_v49  ;;  %3363 = vmatprep.subr.bf16.mxu1 %v3712_v4 }
  0x25   :  { %3329 = vmatpush3.bf16.msra.mxu0 %v3326_v46  ;;  %2786 = vmatprep.mubr.msk.f32.mxu0 %vm54_vm1, %v61_v51 }
  0x26   :  { %3331 = vmatprep.subr.bf16.mxu0 %v3330_v50 }
  0x27   :  { %3365 = vmatpush3.bf16.msra.mxu1 %v3968_v15 }
  0x28   :  { %2787 = vmatmul.mubr.msk.f32.gmra.mrb[2].mxu0 %vm54_vm1, %v62_v54  ;;  %3366 = vmatprep.subr.bf16.mxu1 %v3712_v4 }
  0x29   :  { %3333 = vmatpush3.bf16.msra.mxu0 %v3330_v50  ;;  %2805 = vmatprep.mubr.msk.f32.mxu0 %vm54_vm1, %v278_v56 }
  0x2a   :  { %3335 = vmatprep.subr.bf16.mxu0 %v3334_v55 }
  0x2d   :  { %3337 = vmatpush3.bf16.msra.mxu0 %v3334_v55 }
  0x2e   :  { %3339 = vmatprep.subr.bf16.mxu0 %v3338_v59 }
  0x31   :  { %3341 = vmatpush3.bf16.msra.mxu0 %v3338_v59 }
  0x32   :  { %2846 = vmatprep.subr.mxu0 %v3711_v3 }
  0x34   :  { %2806 = vmatmul.mubr.msk.f32.vlgmr.msra.gmra.mrb[0].mxu0 %vm54_vm1, %v279_v60 }
  0x35   :  { %2808 = vmatprep.mubr.msk.f32.mxu0 %vm54_vm1, %v280_v61  ;;  %2847 = vmatpush3.msra.mxu0 %v3976_v16 }
  0x36   :  { %2886 = vmatprep.subr.mxu0 %v3711_v3 }
  0x38   :  { %2809 = vmatmul.mubr.msk.f32.gmra.mrb[2].mxu0 %vm54_vm1, %v281_v62 }
  0x39   :  { %2848 = vmatprep.mubr.msk.f32.mxu0 %vm3713_vm2, %v3711_v3 }
 0x107   :  { %v3980_v17 = vpop.f32.mrb[0].mxu0 }
 0x108   :  { %v3982_v18 = vpop.f32.mrb[1].mxu0 }
 0x109   :  { %v392_v19 = vadd.f32 %v3980_v17, %v3982_v18 }
 0x10b   :  { %v3986_v20 = vpop.f32.mrb[2].mxu0 }
 0x10c   :  { %v3988_v21 = vpop.f32.mrb[3].mxu0 }
 0x10d   :  { %v393_v22 = vadd.f32 %v392_v19, %v3988_v21 }
 0x10f   :  { %v394_v24 = vadd.f32 %v3986_v20, %v393_v22  ;;  %v3394_v22 = vpack.c.bf16 %v2402_v12, %v2401_v11  ;;  %v849_v11 = vld [vmem:[%s4556_s4 + $0x28] sm:$0xff] }
 0x111   :  { %v395_v25 = vrot.slane %v394_v24, 4 }
 0x113   :  { %v396_v26 = vadd.f32 %v395_v25, %v394_v24  ;;  %v2403_v24 = vld [vmem:[%s4556_s4 + $0xa0] sm:$0xff]  ;;  %v2404_v25 = vld [vmem:[%s4556_s4 + $0xa8] sm:$0xff] }
 0x115   :  { %v397_v27 = vrot.slane %v396_v26, 2 }
 0x117   :  { %v398_v29 = vadd.f32 %v397_v27, %v396_v26  ;;  %v3398_v26 = vpack.c.bf16 %v2404_v25, %v2403_v24  ;;  %v2405_v27 = vld [vmem:[%s4556_s4 + $0xb0] sm:$0xff]  ;;  %v852_v25 = vld [vmem:[%s4556_s4 + $0x40] sm:$0xff] }
 0x119   :  { %v399_v30 = vrot.slane %v398_v29, 1 }
 0x11b   :  { %v400_v31 = vadd.f32 %v399_v30, %v398_v29  ;;  %v2406_v29 = vld [vmem:[%s4556_s4 + $0xb8] sm:$0xff] }
 0x11c   :  { %v3402_v30 = vpack.c.bf16 %v2406_v29, %v2405_v27  ;;  %v854_v29 = vld [vmem:[%s4556_s4 + $0x50] sm:$0xff] }
 0x11d   :  { %2844 = vmatmul.mubr.f32.vlgmr.msra.gmra.mrb[0].mxu1 %v400_v31  ;;  %v2407_v31 = vld [vmem:[%s4556_s4 + $0xc0] sm:$0xff] }
 0x11e   :  { %3368 = vmatpush3.bf16.msra.mxu1 %v3840_v23  ;;  %2883 = vmatprep.mubr.msk.f32.mxu1 %vm3713_vm2, %v3711_v3 }
 0x11f   :  { %3369 = vmatprep.subr.bf16.mxu1 %v3712_v4 }
 0x122   :  { %3371 = vmatpush3.bf16.msra.mxu1 %v3854_v28 }
 0x123   :  { %3372 = vmatprep.subr.bf16.mxu1 %v3712_v4 }
 0x126   :  { %3374 = vmatpush3.bf16.msra.mxu1 %v3867_v35 }
 0x127   :  { %3375 = vmatprep.subr.bf16.mxu1 %v3712_v4 }
 0x12a   :  { %3377 = vmatpush3.bf16.msra.mxu1 %v3925_v1 }
 0x12b   :  { %3378 = vmatprep.subr.bf16.mxu1 %v3712_v4 }
 0x12e   :  { %3380 = vmatpush3.bf16.msra.mxu1 %v3935_v6 }
 0x12f   :  { %3381 = vmatprep.subr.bf16.mxu1 %v3712_v4 }
 0x132   :  { %3383 = vmatpush3.bf16.msra.mxu1 %v3945_v9 }
 0x133   :  { %3384 = vmatprep.subr.bf16.mxu1 %v3712_v4 }
 0x136   :  { %3386 = vmatpush3.bf16.msra.mxu1 %v3958_v13 }
 0x137   :  { %3387 = vmatprep.subr.bf16.mxu1 %v3712_v4 }
 0x13a   :  { %3389 = vmatpush3.bf16.msra.mxu1 %v3968_v15 }
 0x13b   :  { %3486 = vmatprep.subr.bf16.mxu1 %v3712_v4 }
 0x1f0   :  { %v483_v32 = vpop.f32.mrb[0].mxu1 }
 0x1f1   :  { %v4010_v33 = vmul.f32 0.001953125, %v483_v32  ;;  %v2845_v34 = vpop.f32.mrb[1].mxu1  ;;  %v2408_v32 = vld [vmem:[%s4556_s4 + $0xc8] sm:$0xff] }
 0x1f2   :  { %v2409_v34 = vld [vmem:[%s4556_s4 + $0xd0] sm:$0xff] }
 0x1f3   :  { %2849 = vmatmul.mubr.msk.f32.vlgmr.msra.gmra.mrb[4].mxu0 %vm489_vm3, %v4010_v33  ;;  %v3410_v37 = vpack.c.bf16 %v2410_v36, %v2409_v34  ;;  %v858_v36 = vld [vmem:[%s4556_s4 + $0x70] sm:$0xff] }
 0x1f4   :  { %2887 = vmatpush3.msra.mxu0 %v3976_v16  ;;  %2888 = vmatprep.mubr.msk.f32.mxu0 %vm3713_vm2, %v3711_v3 }
 0x1f5   :  { %2891 = vmatprep.subr.mxu0 %v3711_v3 }
 0x2c6   :  { %v559_v39 = vpop.f32.mrb[4].mxu0 }
 0x2c7   :  { %v566_v40 = vrot.slane %v559_v39, %v4018_v38  ;;  %v2850_v41 = vpop.f32.mrb[5].mxu0  ;;  %v2411_v39 = vld [vmem:[%s4556_s4 + $0xe0] sm:$0xff] }
 0x2c9   :  { %v567_v42 = vsub.f32 %v3982_v18, %v566_v40  ;;  %v568_v43 = vsub.f32 %v3980_v17, %v566_v40  ;;  %v569_v44 = vsub.f32 %v3988_v21, %v566_v40  ;;  %v570_v45 = vsub.f32 %v3986_v20, %v566_v40  ;;  %v2412_v40 = vld [vmem:[%s4556_s4 + $0xe8] sm:$0xff] }
 0x2ca   :  { %v3414_v41 = vpack.c.bf16 %v2412_v40, %v2411_v39  ;;  %v2415_v40 = vld [vmem:[%s4556_s4 + $0x100] sm:$0xff] }
 0x2cb   :  { %v571_v46 = vmul.f32 %v567_v42, %v567_v42  ;;  %v572_v47 = vmul.f32 %v568_v43, %v568_v43  ;;  %v573_v48 = vmul.f32 %v569_v44, %v569_v44  ;;  %v574_v50 = vmul.f32 %v570_v45, %v570_v45  ;;  %v2413_v42 = vld [vmem:[%s4556_s4 + $0xf0] sm:$0xff]  ;;  %v2414_v43 = vld [vmem:[%s4556_s4 + $0xf8] sm:$0xff]  ;;  %v844_v45 = vld [vmem:[%s4556_s4] sm:$0xff] }
 0x2cc   :  { %v3418_v44 = vpack.c.bf16 %v2414_v43, %v2413_v42  ;;  %v2417_v43 = vld [vmem:[%s4556_s4 + $0x110] sm:$0xff] }
 0x2cd   :  { %v575_v49 = vadd.f32 %v572_v47, %v571_v46  ;;  %v845_v46 = vld [vmem:[%s4556_s4 + $0x8] sm:$0xff] }
 0x2ce   :  { %v3422_v47 = vpack.c.bf16 %v845_v46, %v844_v45 }
 0x2cf   :  { %v576_v51 = vadd.f32 %v575_v49, %v573_v48 }
 0x2d1   :  { %v577_v52 = vadd.f32 %v576_v51, %v574_v50 }
 0x2d3   :  { %v578_v53 = vrot.slane %v577_v52, 4 }
 0x2d5   :  { %v579_v54 = vadd.f32 %v578_v53, %v577_v52 }
 0x2d7   :  { %v580_v55 = vrot.slane %v579_v54, 2 }
 0x2d9   :  { %v581_v56 = vadd.f32 %v580_v55, %v579_v54 }
 0x2db   :  { %v582_v57 = vrot.slane %v581_v56, 1 }
 0x2dd   :  { %v583_v58 = vadd.f32 %v582_v57, %v581_v56 }
 0x2df   :  { %2884 = vmatmul.mubr.f32.vlgmr.msra.gmra.mrb[2].mxu1 %v583_v58 }
 0x2e0   :  { %3488 = vmatpush3.bf16.msra.mxu1 %v3840_v23  ;;  %3042 = vmatprep.mubr.msk.f32.mxu1 %vm3713_vm2, %v3711_v3 }
 0x2e1   :  { %3489 = vmatprep.subr.bf16.mxu1 %v3712_v4 }
 0x2e4   :  { %3491 = vmatpush3.bf16.msra.mxu1 %v3854_v28 }
 0x2e5   :  { %3492 = vmatprep.subr.bf16.mxu1 %v3712_v4 }
 0x2e8   :  { %3494 = vmatpush3.bf16.msra.mxu1 %v3867_v35 }
 0x2e9   :  { %3495 = vmatprep.subr.bf16.mxu1 %v3712_v4 }
 0x2ec   :  { %3497 = vmatpush3.bf16.msra.mxu1 %v3925_v1 }
 0x2ed   :  { %3498 = vmatprep.subr.bf16.mxu1 %v3712_v4 }
 0x2f0   :  { %3500 = vmatpush3.bf16.msra.mxu1 %v3935_v6 }
 0x2f1   :  { %3501 = vmatprep.subr.bf16.mxu1 %v3712_v4 }
 0x2f4   :  { %3503 = vmatpush3.bf16.msra.mxu1 %v3945_v9 }
 0x2f5   :  { %3504 = vmatprep.subr.bf16.mxu1 %v3712_v4 }
 0x2f8   :  { %3506 = vmatpush3.bf16.msra.mxu1 %v3958_v13 }
 0x2f9   :  { %3507 = vmatprep.subr.bf16.mxu1 %v3712_v4 }
 0x2fc   :  { %3509 = vmatpush3.bf16.msra.mxu1 %v3968_v15 }
 0x2fd   :  { %3045 = vmatprep.subr.mxu1 %v3711_v3 }
 0x3b2   :  { %v650_v59 = vpop.f32.mrb[2].mxu1 }
 0x3b3   :  { %v654_v60 = vmul.f32 0.001953125, %v650_v59  ;;  %v2885_v61 = vpop.f32.mrb[3].mxu1 }
 0x3b5   :  { %v656_v62 = vadd.f32 1e-05, %v654_v60 }
 0x3b7   :  { %3705 = vrsqrt.f32 %v656_v62 }
 0x3c1   :  { %v3706_v5 = vpop.eup %3705 }
 0x3c2   :  { %v658_v7 = vmul.f32 %v3706_v5, %v655_v63 }
 0x3c4   :  { %2889 = vmatmul.mubr.msk.f32.vlgmr.msra.gmra.mrb[6].mxu0 %vm489_vm3, %v658_v7  ;;  %v660_v14 = vmul.f32 %v658_v7, %v4010_v33  ;;  %v3406_v33 = vpack.c.bf16 %v2408_v32, %v2407_v31  ;;  %v856_v32 = vld [vmem:[%s4556_s4 + $0x60] sm:$0xff] }
 0x3c5   :  { %2892 = vmatpush3.msra.mxu0 %v3976_v16  ;;  %2893 = vmatprep.mubr.msk.f32.mxu0 %vm3713_vm2, %v3711_v3 }
 0x3c6   :  { %v661_v19 = vsub.f32 %v659_v10, %v660_v14  ;;  %3391 = vmatprep.subr.bf16.mxu0 %v3390_v8  ;;  %v848_v10 = vld [vmem:[%s4556_s4 + $0x20] sm:$0xff]  ;;  %v850_v14 = vld [vmem:[%s4556_s4 + $0x30] sm:$0xff] }
 0x3c7   :  { %v3430_v12 = vpack.c.bf16 %v849_v11, %v848_v10 }
 0x3c8   :  { %2894 = vmatmul.mubr.msk.f32.vlgmr.msra.gmra.mrb[8].mxu0 %vm489_vm3, %v661_v19  ;;  %v851_v19 = vld [vmem:[%s4556_s4 + $0x38] sm:$0xff] }
 0x3c9   :  { %3393 = vmatpush3.bf16.msra.mxu0 %v3390_v8  ;;  %v3434_v24 = vpack.c.bf16 %v851_v19, %v850_v14 }
 0x3ca   :  { %3395 = vmatprep.subr.bf16.mxu0 %v3394_v22 }
 0x3cd   :  { %3397 = vmatpush3.bf16.msra.mxu0 %v3394_v22 }
 0x3ce   :  { %3399 = vmatprep.subr.bf16.mxu0 %v3398_v26 }
 0x3d1   :  { %3401 = vmatpush3.bf16.msra.mxu0 %v3398_v26  ;;  %v853_v26 = vld [vmem:[%s4556_s4 + $0x48] sm:$0xff] }
 0x3d2   :  { %3403 = vmatprep.subr.bf16.mxu0 %v3402_v30  ;;  %v3438_v27 = vpack.c.bf16 %v853_v26, %v852_v25 }
 0x3d5   :  { %3405 = vmatpush3.bf16.msra.mxu0 %v3402_v30  ;;  %v855_v30 = vld [vmem:[%s4556_s4 + $0x58] sm:$0xff] }
 0x3d6   :  { %3407 = vmatprep.subr.bf16.mxu0 %v3406_v33  ;;  %v3442_v31 = vpack.c.bf16 %v855_v30, %v854_v29 }
 0x3d9   :  { %3409 = vmatpush3.bf16.msra.mxu0 %v3406_v33  ;;  %v857_v33 = vld [vmem:[%s4556_s4 + $0x68] sm:$0xff] }
 0x3da   :  { %3411 = vmatprep.subr.bf16.mxu0 %v3410_v37  ;;  %v3446_v34 = vpack.c.bf16 %v857_v33, %v856_v32 }
 0x3dd   :  { %3413 = vmatpush3.bf16.msra.mxu0 %v3410_v37  ;;  %v859_v37 = vld [vmem:[%s4556_s4 + $0x78] sm:$0xff] }
 0x3de   :  { %3415 = vmatprep.subr.bf16.mxu0 %v3414_v41  ;;  %v3450_v39 = vpack.c.bf16 %v859_v37, %v858_v36 }
 0x3e1   :  { %3417 = vmatpush3.bf16.msra.mxu0 %v3414_v41  ;;  %v2416_v41 = vld [vmem:[%s4556_s4 + $0x108] sm:$0xff] }
 0x3e2   :  { %3419 = vmatprep.subr.bf16.mxu0 %v3418_v44  ;;  %v3454_v42 = vpack.c.bf16 %v2416_v41, %v2415_v40 }
 0x3e5   :  { %3421 = vmatpush3.bf16.msra.mxu0 %v3418_v44  ;;  %v2418_v44 = vld [vmem:[%s4556_s4 + $0x118] sm:$0xff] }
 0x3e6   :  { %3423 = vmatprep.subr.bf16.mxu0 %v3422_v47  ;;  %v3458_v45 = vpack.c.bf16 %v2418_v44, %v2417_v43 }
 0x497   :  { %v731_v48 = vpop.f32.mrb[6].mxu0 }
 0x498   :  { %v811_v49 = vrot.slane %v731_v48, %v4018_v38  ;;  %v2890_v50 = vpop.f32.mrb[7].mxu0  ;;  %v2420_v48 = vld [vmem:[%s4556_s4 + $0x128] sm:$0xff] }
 0x49a   :  { %v812_v51 = vmul.f32 %v811_v49, %v3982_v18  ;;  %v813_v52 = vmul.f32 %v3980_v17, %v811_v49  ;;  %v814_v53 = vmul.f32 %v811_v49, %v3988_v21  ;;  %v815_v54 = vmul.f32 %v3986_v20, %v811_v49  ;;  %v846_v17 = vld [vmem:[%s4556_s4 + $0x10] sm:$0xff]  ;;  %v847_v18 = vld [vmem:[%s4556_s4 + $0x18] sm:$0xff] }
 0x49b   :  { %v804_v55 = vpop.f32.mrb[8].mxu0  ;;  %v3426_v7 = vpack.c.bf16 %v847_v18, %v846_v17  ;;  %v2427_v17 = vld [vmem:[%s4556_s4 + $0x160] sm:$0xff]  ;;  %v2428_v18 = vld [vmem:[%s4556_s4 + $0x168] sm:$0xff] }
 0x49c   :  { %v819_v56 = vrot.slane %v804_v55, %v4018_v38  ;;  %v2895_v57 = vpop.f32.mrb[9].mxu0 }
 0x49d   :  { %v2424_v57 = vld [vmem:[%s4556_s4 + $0x148] sm:$0xff] }
 0x49e   :  { %v820_v58 = vadd.f32 %v819_v56, %v812_v51  ;;  %v821_v59 = vadd.f32 %v819_v56, %v813_v52  ;;  %v822_v60 = vadd.f32 %v819_v56, %v814_v53  ;;  %v823_v61 = vadd.f32 %v819_v56, %v815_v54  ;;  %v2421_v52 = vld [vmem:[%s4556_s4 + $0x130] sm:$0xff]  ;;  %v2422_v53 = vld [vmem:[%s4556_s4 + $0x138] sm:$0xff]  ;;  %v2423_v56 = vld [vmem:[%s4556_s4 + $0x140] sm:$0xff] }
 0x49f   :  { %v3466_v55 = vpack.c.bf16 %v2422_v53, %v2421_v52  ;;  %v2434_v52 = vld [vmem:[%s4559_s7 + $0x80] sm:$0xff]  ;;  %v2435_v53 = vld [vmem:[%s4559_s7 + $0x88] sm:$0xff] }
 0x4a0   :  { %vm824_vm4 = vcmp.ge.f32.partialorder %v820_v58, 0.0  ;;  %vm825_vm5 = vcmp.ge.f32.partialorder %v821_v59, 0.0  ;;  %vm826_vm6 = vcmp.ge.f32.partialorder %v822_v60, 0.0  ;;  %vm827_vm7 = vcmp.ge.f32.partialorder %v823_v61, 0.0 }
 0x4a1   :  { %v828_v20 = vmul.f32 0.01, %v820_v58  ;;  %v829_v21 = vmul.f32 0.01, %v821_v59  ;;  %v830_v62 = vmul.f32 0.01, %v822_v60 }
 0x4a2   :  { %v831_v63 = vmul.f32 0.01, %v823_v61 }
 0x4a3   :  { %v832_v0 = vsel %vm824_vm4, %v820_v58, %v828_v20  ;;  %v833_v2 = vsel %vm825_vm5, %v821_v59, %v829_v21  ;;  %v834_v5 = vsel %vm826_vm6, %v822_v60, %v830_v62  ;;  %v3470_v58 = vpack.c.bf16 %v2424_v57, %v2423_v56  ;;  %v2425_v59 = vld [vmem:[%s4556_s4 + $0x150] sm:$0xff]  ;;  %v2426_v60 = vld [vmem:[%s4556_s4 + $0x158] sm:$0xff]  ;;  %v1427_v57 = vld [vmem:[%s4560_s6] sm:$0x1] }
 0x4a4   :  { %v835_v8 = vsel %vm827_vm7, %v823_v61, %v831_v63  ;;  %836 = vst [vmem:[#allocation3 + $0x8] sm:$0xff] %v832_v0  ;;  %837 = vst [vmem:[#allocation3 + $0x10] sm:$0xff] %v833_v2  ;;  %2928 = vmatprep.mubr.f32.mxu0 %v832_v0  ;;  %v3474_v61 = vpack.c.bf16 %v2426_v60, %v2425_v59  ;;  %v3478_v20 = vpack.c.bf16 %v2428_v18, %v2427_v17  ;;  %v2429_v21 = vld [vmem:[%s4556_s4 + $0x170] sm:$0xff]  ;;  %v2430_v62 = vld [vmem:[%s4556_s4 + $0x178] sm:$0xff] }
 0x4a5   :  { %838 = vst [vmem:[#allocation3 + $0x28] sm:$0xff] %v834_v5  ;;  %839 = vst [vmem:[#allocation3 + $0x30] sm:$0xff] %v835_v8  ;;  %2929 = vmatmul.mubr.f32.vlgmr.msra.gmra.mrb[10].mxu0 %v833_v2  ;;  %v3482_v63 = vpack.c.bf16 %v2430_v62, %v2429_v21  ;;  %v3534_v56 = vpack.c.bf16 %v2435_v53, %v2434_v52  ;;  %v2437_v59 = vld [vmem:[%s4559_s7 + $0x98] sm:$0xff]  ;;  %v2438_v18 = vld [vmem:[%s4559_s7 + $0xa0] sm:$0xff] }
 0x4a6   :  { %3425 = vmatpush3.bf16.msra.mxu0 %v3422_v47  ;;  %2931 = vmatprep.mubr.f32.mxu0 %v834_v5  ;;  %v2419_v47 = vld [vmem:[%s4556_s4 + $0x120] sm:$0xff]  ;;  %v2441_v62 = vld [vmem:[%s4559_s7 + $0xb8] sm:$0xff] }
 0x4a7   :  { %3427 = vmatprep.subr.bf16.mxu0 %v3426_v7  ;;  %v3462_v50 = vpack.c.bf16 %v2420_v48, %v2419_v47 }
 0x4a9   :  { %2932 = vmatmul.mubr.f32.gmra.mrb[12].mxu0 %v835_v8 }
 0x4aa   :  { %3429 = vmatpush3.bf16.msra.mxu0 %v3426_v7 }
 0x4ab   :  { %v840_v22 = vld [vmem:[#allocation3 + $0x7] sm:$0xff]  ;;  %3431 = vmatprep.subr.bf16.mxu0 %v3430_v12  ;;  %v841_v46 = vld [vmem:[#allocation3 + $0xf] sm:$0xff] }
 0x4ac   :  { %2966 = vmatprep.mubr.f32.mxu0 %v840_v22  ;;  %v842_v49 = vld [vmem:[#allocation3 + $0x27] sm:$0xff]  ;;  %v843_v51 = vld [vmem:[#allocation3 + $0x2f] sm:$0xff] }
 0x4ad   :  { %v1051_v54 = vld [vmem:[#allocation3 + $0x9] sm:$0xff]  ;;  %v1052_v0 = vld [vmem:[#allocation3 + $0x11] sm:$0xff] }
 0x4ae   :  { %3433 = vmatpush3.bf16.msra.mxu0 %v3430_v12  ;;  %v1053_v2 = vld [vmem:[#allocation3 + $0x29] sm:$0xff]  ;;  %v1054_v5 = vld [vmem:[#allocation3 + $0x31] sm:$0xff] }
 0x4af   :  { %3435 = vmatprep.subr.bf16.mxu0 %v3434_v24 }
 0x4b2   :  { %3437 = vmatpush3.bf16.msra.mxu0 %v3434_v24 }
 0x4b3   :  { %3439 = vmatprep.subr.bf16.mxu0 %v3438_v27 }
 0x4b6   :  { %3441 = vmatpush3.bf16.msra.mxu0 %v3438_v27 }
 0x4b7   :  { %3443 = vmatprep.subr.bf16.mxu0 %v3442_v31 }
 0x4ba   :  { %3445 = vmatpush3.bf16.msra.mxu0 %v3442_v31 }
 0x4bb   :  { %3447 = vmatprep.subr.bf16.mxu0 %v3446_v34 }
 0x4be   :  { %3449 = vmatpush3.bf16.msra.mxu0 %v3446_v34 }
 0x4bf   :  { %3451 = vmatprep.subr.bf16.mxu0 %v3450_v39 }
 0x4c2   :  { %3453 = vmatpush3.bf16.msra.mxu0 %v3450_v39 }
 0x4c3   :  { %3455 = vmatprep.subr.bf16.mxu0 %v3454_v42 }
 0x4c5   :  { %2967 = vmatmul.mubr.f32.vlgmr.msra.gmra.mrb[10].mxu0 %v841_v46 }
 0x4c6   :  { %2969 = vmatprep.mubr.f32.mxu0 %v842_v49  ;;  %3457 = vmatpush3.bf16.msra.mxu0 %v3454_v42 }
 0x4c7   :  { %3459 = vmatprep.subr.bf16.mxu0 %v3458_v45 }
 0x4c9   :  { %2970 = vmatmul.mubr.f32.gmra.mrb[12].mxu0 %v843_v51  ;;  %v1423_v51 = vld [vmem:[%s4558_s5] sm:$0x1] }
 0x4ca   :  { %3461 = vmatpush3.bf16.msra.mxu0 %v3458_v45  ;;  %3004 = vmatprep.mubr.f32.mxu0 %v1051_v54 }
 0x4cb   :  { %3463 = vmatprep.subr.bf16.mxu0 %v3462_v50 }
 0x4ce   :  { %3465 = vmatpush3.bf16.msra.mxu0 %v3462_v50 }
 0x4cf   :  { %3467 = vmatprep.subr.bf16.mxu0 %v3466_v55 }
 0x4d2   :  { %3469 = vmatpush3.bf16.msra.mxu0 %v3466_v55 }
 0x4d3   :  { %3471 = vmatprep.subr.bf16.mxu0 %v3470_v58 }
 0x4d6   :  { %3473 = vmatpush3.bf16.msra.mxu0 %v3470_v58  ;;  %v2436_v58 = vld [vmem:[%s4559_s7 + $0x90] sm:$0xff] }
 0x4d7   :  { %3475 = vmatprep.subr.bf16.mxu0 %v3474_v61  ;;  %v3538_v17 = vpack.c.bf16 %v2437_v59, %v2436_v58  ;;  %v1617_v58 = vld [vmem:[%s4559_s7 + $0x28] sm:$0xff] }
 0x4da   :  { %3477 = vmatpush3.bf16.msra.mxu0 %v3474_v61 }
 0x4db   :  { %3479 = vmatprep.subr.bf16.mxu0 %v3478_v20 }
 0x4de   :  { %3481 = vmatpush3.bf16.msra.mxu0 %v3478_v20  ;;  %v2439_v20 = vld [vmem:[%s4559_s7 + $0xa8] sm:$0xff] }
 0x4df   :  { %3483 = vmatprep.subr.bf16.mxu0 %v3482_v63  ;;  %v3542_v21 = vpack.c.bf16 %v2439_v20, %v2438_v18  ;;  %v1620_v20 = vld [vmem:[%s4559_s7 + $0x40] sm:$0xff] }
 0x4e2   :  { %3485 = vmatpush3.bf16.msra.mxu0 %v3482_v63 }
 0x4e3   :  { %3630 = vmatprep.subr.bf16.mxu0 %v3712_v4 }
 0x4e5   :  { %3005 = vmatmul.mubr.f32.vlgmr.msra.gmra.mrb[10].mxu0 %v1052_v0  ;;  %v2442_v0 = vld [vmem:[%s4559_s7 + $0xc0] sm:$0xff] }
 0x4e6   :  { %3007 = vmatprep.mubr.f32.mxu0 %v1053_v2  ;;  %v2443_v2 = vld [vmem:[%s4559_s7 + $0xc8] sm:$0xff] }
 0x4e9   :  { %3008 = vmatmul.mubr.f32.gmra.mrb[12].mxu0 %v1054_v5  ;;  %v3550_v5 = vpack.c.bf16 %v2443_v2, %v2442_v0  ;;  %v1624_v2 = vld [vmem:[%s4559_s7 + $0x60] sm:$0xff] }
 0x4ea   :  { %3241 = vmatprep.mubr.msk.f32.mxu0 %vm3713_vm2, %v3711_v3 }
 0x5b8   :  { %v4208_v7 = vpop.f32.mrb[10].mxu0 }
 0x5b9   :  { %v4210_v8 = vpop.f32.mrb[11].mxu0 }
 0x5ba   :  { %v1161_v10 = vadd.f32 %v4208_v7, %v4210_v8 }
 0x5bc   :  { %v4214_v11 = vpop.f32.mrb[12].mxu0 }
 0x5bd   :  { %v4216_v12 = vpop.f32.mrb[13].mxu0 }
 0x5be   :  { %v1162_v14 = vadd.f32 %v1161_v10, %v4216_v12  ;;  %v2444_v10 = vld [vmem:[%s4559_s7 + $0xd0] sm:$0xff] }
 0x5c0   :  { %v1163_v19 = vadd.f32 %v4214_v11, %v1162_v14  ;;  %v2445_v14 = vld [vmem:[%s4559_s7 + $0xd8] sm:$0xff] }
 0x5c2   :  { %v1164_v22 = vrot.slane %v1163_v19, 4 }
 0x5c4   :  { %v1165_v24 = vadd.f32 %v1164_v22, %v1163_v19  ;;  %v3554_v19 = vpack.c.bf16 %v2445_v14, %v2444_v10  ;;  %v2446_v22 = vld [vmem:[%s4559_s7 + $0xe0] sm:$0xff]  ;;  %v1626_v14 = vld [vmem:[%s4559_s7 + $0x70] sm:$0xff] }
 0x5c6   :  { %v1166_v25 = vrot.slane %v1165_v24, 2 }
 0x5c8   :  { %v1167_v26 = vadd.f32 %v1166_v25, %v1165_v24  ;;  %v2447_v24 = vld [vmem:[%s4559_s7 + $0xe8] sm:$0xff] }
 0x5c9   :  { %v3558_v25 = vpack.c.bf16 %v2447_v24, %v2446_v22  ;;  %v2450_v24 = vld [vmem:[%s4559_s7 + $0x100] sm:$0xff] }
 0x5ca   :  { %v1168_v27 = vrot.slane %v1167_v26, 1 }
 0x5cc   :  { %v1169_v29 = vadd.f32 %v1168_v27, %v1167_v26  ;;  %v2448_v26 = vld [vmem:[%s4559_s7 + $0xf0] sm:$0xff]  ;;  %v2449_v27 = vld [vmem:[%s4559_s7 + $0xf8] sm:$0xff] }
 0x5ce   :  { %3043 = vmatmul.mubr.f32.vlgmr.msra.gmra.mrb[4].mxu1 %v1169_v29  ;;  %v3562_v29 = vpack.c.bf16 %v2449_v27, %v2448_v26  ;;  %v2452_v27 = vld [vmem:[%s4559_s7 + $0x110] sm:$0xff] }
 0x5cf   :  { %3046 = vmatpush3.msra.mxu1 %v3976_v16  ;;  %3047 = vmatprep.mubr.msk.f32.mxu1 %vm3713_vm2, %v3711_v3 }
 0x5d0   :  { %3510 = vmatprep.subr.bf16.mxu1 %v3712_v4 }
 0x6a1   :  { %v1252_v30 = vpop.f32.mrb[4].mxu1 }
 0x6a2   :  { %v1256_v31 = vmul.f32 0.001953125, %v1252_v30  ;;  %v3044_v32 = vpop.f32.mrb[5].mxu1  ;;  %v1612_v30 = vld [vmem:[%s4559_s7] sm:$0xff] }
 0x6a4   :  { %3048 = vmatmul.mubr.msk.f32.vlgmr.msra.gmra.mrb[6].mxu1 %vm489_vm3, %v1256_v31 }
 0x6a5   :  { %3512 = vmatpush3.bf16.msra.mxu1 %v3840_v23  ;;  %3082 = vmatprep.mubr.msk.f32.mxu1 %vm3713_vm2, %v3711_v3 }
 0x6a6   :  { %3513 = vmatprep.subr.bf16.mxu1 %v3712_v4 }
 0x6a9   :  { %3515 = vmatpush3.bf16.msra.mxu1 %v3854_v28 }
 0x6aa   :  { %3516 = vmatprep.subr.bf16.mxu1 %v3712_v4 }
 0x6ad   :  { %3518 = vmatpush3.bf16.msra.mxu1 %v3867_v35 }
 0x6ae   :  { %3519 = vmatprep.subr.bf16.mxu1 %v3712_v4 }
 0x6b1   :  { %3521 = vmatpush3.bf16.msra.mxu1 %v3925_v1 }
 0x6b2   :  { %3522 = vmatprep.subr.bf16.mxu1 %v3712_v4 }
 0x6b5   :  { %3524 = vmatpush3.bf16.msra.mxu1 %v3935_v6 }
 0x6b6   :  { %3525 = vmatprep.subr.bf16.mxu1 %v3712_v4 }
 0x6b9   :  { %3527 = vmatpush3.bf16.msra.mxu1 %v3945_v9 }
 0x6ba   :  { %3528 = vmatprep.subr.bf16.mxu1 %v3712_v4 }
 0x6bd   :  { %3530 = vmatpush3.bf16.msra.mxu1 %v3958_v13 }
 0x6be   :  { %3531 = vmatprep.subr.bf16.mxu1 %v3712_v4 }
 0x6c1   :  { %3533 = vmatpush3.bf16.msra.mxu1 %v3968_v15 }
 0x6c2   :  { %3085 = vmatprep.subr.mxu1 %v3711_v3 }
 0x777   :  { %v1327_v23 = vpop.f32.mrb[6].mxu1 }
 0x778   :  { %v1334_v28 = vrot.slane %v1327_v23, %v4018_v38  ;;  %v3049_v35 = vpop.f32.mrb[7].mxu1  ;;  %v1938_v23 = vld [vmem:[%s4553_s10] sm:$0xff] }
 0x779   :  { %v1940_v35 = vld [vmem:[%s4553_s10 + $0x10] sm:$0xff] }
 0x77a   :  { %v1335_v1 = vsub.f32 %v4210_v8, %v1334_v28  ;;  %v1336_v6 = vsub.f32 %v4208_v7, %v1334_v28  ;;  %v1337_v9 = vsub.f32 %v4216_v12, %v1334_v28  ;;  %v1338_v33 = vsub.f32 %v4214_v11, %v1334_v28  ;;  %v1939_v28 = vld [vmem:[%s4553_s10 + $0x8] sm:$0xff] }
 0x77c   :  { %v1339_v34 = vmul.f32 %v1335_v1, %v1335_v1  ;;  %v1340_v13 = vmul.f32 %v1336_v6, %v1336_v6  ;;  %v1341_v36 = vmul.f32 %v1337_v9, %v1337_v9  ;;  %v1342_v39 = vmul.f32 %v1338_v33, %v1338_v33  ;;  %v1941_v6 = vld [vmem:[%s4553_s10 + $0x18] sm:$0xff]  ;;  %v1942_v33 = vld [vmem:[%s4553_s10 + $0x20] sm:$0xff] }
 0x77d   :  { %v4326_v1 = vpack.c.bf16 %v1939_v28, %v1938_v23  ;;  %v4332_v9 = vpack.c.bf16 %v1941_v6, %v1940_v35  ;;  %v2455_v23 = vld [vmem:[%s4559_s7 + $0x128] sm:$0xff] }
 0x77e   :  { %v1343_v37 = vadd.f32 %v1340_v13, %v1339_v34  ;;  %v1943_v34 = vld [vmem:[%s4553_s10 + $0x28] sm:$0xff] }
 0x77f   :  { %3632 = vmatpush3.bf16.msra.mxu0 %v4326_v1  ;;  %v4342_v13 = vpack.c.bf16 %v1943_v34, %v1942_v33  ;;  %v2456_v33 = vld [vmem:[%s4559_s7 + $0x130] sm:$0xff]  ;;  %v2457_v34 = vld [vmem:[%s4559_s7 + $0x138] sm:$0xff] }
 0x780   :  { %v1344_v15 = vadd.f32 %v1343_v37, %v1341_v36  ;;  %3633 = vmatprep.subr.bf16.mxu0 %v3712_v4 }
 0x782   :  { %v1345_v40 = vadd.f32 %v1344_v15, %v1342_v39 }
 0x783   :  { %3635 = vmatpush3.bf16.msra.mxu0 %v4332_v9 }
 0x784   :  { %v1346_v41 = vrot.slane %v1345_v40, 4  ;;  %3636 = vmatprep.subr.bf16.mxu0 %v3712_v4 }
 0x786   :  { %v1347_v42 = vadd.f32 %v1346_v41, %v1345_v40 }
 0x787   :  { %3638 = vmatpush3.bf16.msra.mxu0 %v4342_v13 }
 0x788   :  { %v1348_v43 = vrot.slane %v1347_v42, 2  ;;  %3639 = vmatprep.subr.bf16.mxu0 %v3712_v4 }
 0x78a   :  { %v1349_v44 = vadd.f32 %v1348_v43, %v1347_v42 }
 0x78c   :  { %v1350_v45 = vrot.slane %v1349_v44, 1 }
 0x78e   :  { %v1351_v46 = vadd.f32 %v1350_v45, %v1349_v44 }
 0x790   :  { %3083 = vmatmul.mubr.f32.vlgmr.msra.gmra.mrb[8].mxu1 %v1351_v46 }
 0x791   :  { %3086 = vmatpush3.msra.mxu1 %v3976_v16  ;;  %3087 = vmatprep.mubr.msk.f32.mxu1 %vm3713_vm2, %v3711_v3 }
 0x792   :  { %3090 = vmatprep.subr.mxu1 %v3711_v3 }
 0x863   :  { %v1418_v47 = vpop.f32.mrb[8].mxu1 }
 0x864   :  { %v1422_v48 = vmul.f32 0.001953125, %v1418_v47  ;;  %v3084_v49 = vpop.f32.mrb[9].mxu1 }
 0x866   :  { %v1424_v50 = vadd.f32 1e-05, %v1422_v48 }
 0x868   :  { %3707 = vrsqrt.f32 %v1424_v50 }
 0x872   :  { %v3708_v54 = vpop.eup %3707 }
 0x873   :  { %v1426_v55 = vmul.f32 %v3708_v54, %v1423_v51 }
 0x875   :  { %3088 = vmatmul.mubr.msk.f32.vlgmr.msra.gmra.mrb[10].mxu1 %vm489_vm3, %v1426_v55  ;;  %v1428_v60 = vmul.f32 %v1426_v55, %v1256_v31  ;;  %v1613_v31 = vld [vmem:[%s4559_s7 + $0x8] sm:$0xff] }
 0x876   :  { %3091 = vmatpush3.msra.mxu1 %v3976_v16  ;;  %3092 = vmatprep.mubr.msk.f32.mxu1 %vm3713_vm2, %v3711_v3  ;;  %v2440_v16 = vld [vmem:[%s4559_s7 + $0xb0] sm:$0xff]  ;;  %v3566_v32 = vpack.c.bf16 %v1613_v31, %v1612_v30 }
 0x877   :  { %v1429_v61 = vsub.f32 %v1427_v57, %v1428_v60  ;;  %3535 = vmatprep.subr.bf16.mxu1 %v3534_v56  ;;  %v3546_v63 = vpack.c.bf16 %v2441_v62, %v2440_v16  ;;  %v1616_v57 = vld [vmem:[%s4559_s7 + $0x20] sm:$0xff]  ;;  %v1618_v60 = vld [vmem:[%s4559_s7 + $0x30] sm:$0xff] }
 0x878   :  { %v3574_v59 = vpack.c.bf16 %v1617_v58, %v1616_v57  ;;  %v1622_v62 = vld [vmem:[%s4559_s7 + $0x50] sm:$0xff]  ;;  %v1950_v58 = vld [vmem:[%s4553_s10 + $0x60] sm:$0xff] }
 0x879   :  { %3093 = vmatmul.mubr.msk.f32.vlgmr.msra.gmra.mrb[12].mxu1 %vm489_vm3, %v1429_v61  ;;  %v1619_v61 = vld [vmem:[%s4559_s7 + $0x38] sm:$0xff] }
 0x87a   :  { %3537 = vmatpush3.bf16.msra.mxu1 %v3534_v56  ;;  %v3578_v18 = vpack.c.bf16 %v1619_v61, %v1618_v60  ;;  %v1952_v61 = vld [vmem:[%s4553_s10 + $0x70] sm:$0xff] }
 0x87b   :  { %3539 = vmatprep.subr.bf16.mxu1 %v3538_v17 }
 0x87e   :  { %3541 = vmatpush3.bf16.msra.mxu1 %v3538_v17 }
 0x87f   :  { %3543 = vmatprep.subr.bf16.mxu1 %v3542_v21 }
 0x882   :  { %3545 = vmatpush3.bf16.msra.mxu1 %v3542_v21  ;;  %v1621_v21 = vld [vmem:[%s4559_s7 + $0x48] sm:$0xff] }
 0x883   :  { %3547 = vmatprep.subr.bf16.mxu1 %v3546_v63  ;;  %v3582_v16 = vpack.c.bf16 %v1621_v21, %v1620_v20 }
 0x886   :  { %3549 = vmatpush3.bf16.msra.mxu1 %v3546_v63  ;;  %v1623_v63 = vld [vmem:[%s4559_s7 + $0x58] sm:$0xff] }
 0x887   :  { %3551 = vmatprep.subr.bf16.mxu1 %v3550_v5  ;;  %v3586_v0 = vpack.c.bf16 %v1623_v63, %v1622_v62 }
 0x88a   :  { %3553 = vmatpush3.bf16.msra.mxu1 %v3550_v5  ;;  %v1625_v5 = vld [vmem:[%s4559_s7 + $0x68] sm:$0xff] }
 0x88b   :  { %3555 = vmatprep.subr.bf16.mxu1 %v3554_v19  ;;  %v3590_v10 = vpack.c.bf16 %v1625_v5, %v1624_v2 }
 0x88e   :  { %3557 = vmatpush3.bf16.msra.mxu1 %v3554_v19  ;;  %v1627_v19 = vld [vmem:[%s4559_s7 + $0x78] sm:$0xff] }
 0x88f   :  { %3559 = vmatprep.subr.bf16.mxu1 %v3558_v25  ;;  %v3594_v22 = vpack.c.bf16 %v1627_v19, %v1626_v14 }
 0x892   :  { %3561 = vmatpush3.bf16.msra.mxu1 %v3558_v25  ;;  %v2451_v25 = vld [vmem:[%s4559_s7 + $0x108] sm:$0xff] }
 0x893   :  { %3563 = vmatprep.subr.bf16.mxu1 %v3562_v29  ;;  %v3598_v26 = vpack.c.bf16 %v2451_v25, %v2450_v24  ;;  %v4493_v25 = vld [vmem:[%s4554_s11] sm:$0xff] }
 0x896   :  { %3565 = vmatpush3.bf16.msra.mxu1 %v3562_v29  ;;  %v2453_v29 = vld [vmem:[%s4559_s7 + $0x118] sm:$0xff] }
 0x897   :  { %3567 = vmatprep.subr.bf16.mxu1 %v3566_v32  ;;  %v3602_v30 = vpack.c.bf16 %v2453_v29, %v2452_v27 }
 0x948   :  { %v1499_v36 = vpop.f32.mrb[10].mxu1 }
 0x949   :  { %v1579_v37 = vrot.slane %v1499_v36, %v4018_v38  ;;  %v3089_v39 = vpop.f32.mrb[11].mxu1 }
 0x94a   :  { %v2458_v39 = vld [vmem:[%s4559_s7 + $0x140] sm:$0xff] }
 0x94b   :  { %v1580_v15 = vmul.f32 %v1579_v37, %v4210_v8  ;;  %v1581_v40 = vmul.f32 %v4208_v7, %v1579_v37  ;;  %v1582_v41 = vmul.f32 %v1579_v37, %v4216_v12  ;;  %v1583_v42 = vmul.f32 %v4214_v11, %v1579_v37  ;;  %v1614_v7 = vld [vmem:[%s4559_s7 + $0x10] sm:$0xff]  ;;  %v1615_v8 = vld [vmem:[%s4559_s7 + $0x18] sm:$0xff] }
 0x94c   :  { %v1572_v43 = vpop.f32.mrb[12].mxu1  ;;  %v3570_v55 = vpack.c.bf16 %v1615_v8, %v1614_v7  ;;  %v3610_v37 = vpack.c.bf16 %v2457_v34, %v2456_v33 }
 0x94d   :  { %v1587_v44 = vrot.slane %v1572_v43, %v4018_v38  ;;  %v3094_v45 = vpop.f32.mrb[13].mxu1 }
 0x94e   :  { %v2463_v45 = vld [vmem:[%s4559_s7 + $0x168] sm:$0xff] }
 0x94f   :  { %v1588_v46 = vadd.f32 %v1587_v44, %v1580_v15  ;;  %v1589_v47 = vadd.f32 %v1587_v44, %v1581_v40  ;;  %v1590_v48 = vadd.f32 %v1587_v44, %v1582_v41  ;;  %v1591_v49 = vadd.f32 %v1587_v44, %v1583_v42  ;;  %v2459_v15 = vld [vmem:[%s4559_s7 + $0x148] sm:$0xff]  ;;  %v2460_v41 = vld [vmem:[%s4559_s7 + $0x150] sm:$0xff]  ;;  %v2461_v42 = vld [vmem:[%s4559_s7 + $0x158] sm:$0xff] }
 0x950   :  { %v3614_v40 = vpack.c.bf16 %v2459_v15, %v2458_v39  ;;  %v3618_v43 = vpack.c.bf16 %v2461_v42, %v2460_v41  ;;  %v2462_v44 = vld [vmem:[%s4559_s7 + $0x160] sm:$0xff] }
 0x951   :  { %vm1592_vm8 = vcmp.ge.f32.partialorder %v1588_v46, 0.0  ;;  %vm1593_vm9 = vcmp.ge.f32.partialorder %v1589_v47, 0.0  ;;  %vm1594_vm10 = vcmp.ge.f32.partialorder %v1590_v48, 0.0  ;;  %vm1595_vm11 = vcmp.ge.f32.partialorder %v1591_v49, 0.0 }
 0x952   :  { %v1596_v11 = vmul.f32 0.01, %v1588_v46  ;;  %v1597_v12 = vmul.f32 0.01, %v1589_v47  ;;  %v1598_v50 = vmul.f32 0.01, %v1590_v48 }
 0x953   :  { %v1599_v51 = vmul.f32 0.01, %v1591_v49 }
 0x954   :  { %v1600_v52 = vsel %vm1592_vm8, %v1588_v46, %v1596_v11  ;;  %v1601_v53 = vsel %vm1593_vm9, %v1589_v47, %v1597_v12  ;;  %v1602_v54 = vsel %vm1594_vm10, %v1590_v48, %v1598_v50  ;;  %v3622_v46 = vpack.c.bf16 %v2463_v45, %v2462_v44  ;;  %v2464_v47 = vld [vmem:[%s4559_s7 + $0x170] sm:$0xff]  ;;  %v2465_v48 = vld [vmem:[%s4559_s7 + $0x178] sm:$0xff] }
 0x955   :  { %v1603_v56 = vsel %vm1595_vm11, %v1591_v49, %v1599_v51  ;;  %1604 = vst [vmem:[#allocation3 + $0x8] sm:$0xff] %v1600_v52  ;;  %1605 = vst [vmem:[#allocation3 + $0x10] sm:$0xff] %v1601_v53  ;;  %3127 = vmatprep.mubr.f32.mxu1 %v1600_v52  ;;  %v3626_v49 = vpack.c.bf16 %v2465_v48, %v2464_v47  ;;  %v1944_v12 = vld [vmem:[%s4553_s10 + $0x30] sm:$0xff]  ;;  %v1945_v50 = vld [vmem:[%s4553_s10 + $0x38] sm:$0xff] }
 0x956   :  { %1606 = vst [vmem:[#allocation3 + $0x28] sm:$0xff] %v1602_v54  ;;  %1607 = vst [vmem:[#allocation3 + $0x30] sm:$0xff] %v1603_v56  ;;  %3128 = vmatmul.mubr.f32.vlgmr.msra.gmra.mrb[14].mxu1 %v1601_v53  ;;  %v3640_v51 = vpack.c.bf16 %v1945_v50, %v1944_v12  ;;  %v1946_v52 = vld [vmem:[%s4553_s10 + $0x40] sm:$0xff]  ;;  %v1947_v53 = vld [vmem:[%s4553_s10 + $0x48] sm:$0xff] }
 0x957   :  { %3569 = vmatpush3.bf16.msra.mxu1 %v3566_v32  ;;  %3130 = vmatprep.mubr.f32.mxu1 %v1602_v54  ;;  %v2454_v32 = vld [vmem:[%s4559_s7 + $0x120] sm:$0xff]  ;;  %v3643_v54 = vpack.c.bf16 %v1947_v53, %v1946_v52 }
 0x958   :  { %3571 = vmatprep.subr.bf16.mxu1 %v3570_v55  ;;  %v3606_v35 = vpack.c.bf16 %v2455_v23, %v2454_v32  ;;  %3641 = vmatpush3.bf16.msra.mxu0 %v3640_v51  ;;  %v2191_v47 = vld [vmem:[%s4561_s8] sm:$0x1] }
 0x959   :  { %3642 = vmatprep.subr.bf16.mxu0 %v3712_v4 }
 0x95a   :  { %3131 = vmatmul.mubr.f32.gmra.mrb[16].mxu1 %v1603_v56  ;;  %v1949_v56 = vld [vmem:[%s4553_s10 + $0x58] sm:$0xff] }
 0x95b   :  { %3573 = vmatpush3.bf16.msra.mxu1 %v3570_v55  ;;  %v1948_v55 = vld [vmem:[%s4553_s10 + $0x50] sm:$0xff] }
 0x95c   :  { %v1608_v17 = vld [vmem:[#allocation3 + $0x7] sm:$0xff]  ;;  %3575 = vmatprep.subr.bf16.mxu1 %v3574_v59  ;;  %v1609_v31 = vld [vmem:[#allocation3 + $0xf] sm:$0xff]  ;;  %3644 = vmatpush3.bf16.msra.mxu0 %v3643_v54  ;;  %v3646_v57 = vpack.c.bf16 %v1949_v56, %v1948_v55 }
 0x95d   :  { %3165 = vmatprep.mubr.f32.mxu1 %v1608_v17  ;;  %v1610_v28 = vld [vmem:[#allocation3 + $0x27] sm:$0xff]  ;;  %v1611_v6 = vld [vmem:[#allocation3 + $0x2f] sm:$0xff]  ;;  %3645 = vmatprep.subr.bf16.mxu0 %v3712_v4  ;;  %v1953_v17 = vld [vmem:[%s4553_s10 + $0x78] sm:$0xff] }
 0x95e   :  { %v1819_v36 = vld [vmem:[#allocation3 + $0x9] sm:$0xff]  ;;  %v1820_v7 = vld [vmem:[#allocation3 + $0x11] sm:$0xff] }
 0x95f   :  { %3577 = vmatpush3.bf16.msra.mxu1 %v3574_v59  ;;  %v1821_v8 = vld [vmem:[#allocation3 + $0x29] sm:$0xff]  ;;  %v1822_v11 = vld [vmem:[#allocation3 + $0x31] sm:$0xff] }
 0x960   :  { %3579 = vmatprep.subr.bf16.mxu1 %v3578_v18  ;;  %3647 = vmatpush3.bf16.msra.mxu0 %v3646_v57  ;;  %v1951_v59 = vld [vmem:[%s4553_s10 + $0x68] sm:$0xff] }
 0x961   :  { %3648 = vmatprep.subr.bf16.mxu0 %v3712_v4  ;;  %v3649_v60 = vpack.c.bf16 %v1951_v59, %v1950_v58 }
 0x963   :  { %3581 = vmatpush3.bf16.msra.mxu1 %v3578_v18  ;;  %v3652_v18 = vpack.c.bf16 %v1953_v17, %v1952_v61 }
 0x964   :  { %3583 = vmatprep.subr.bf16.mxu1 %v3582_v16  ;;  %3650 = vmatpush3.bf16.msra.mxu0 %v3649_v60 }
 0x965   :  { %3651 = vmatprep.subr.bf16.mxu0 %v3712_v4 }
 0x967   :  { %3585 = vmatpush3.bf16.msra.mxu1 %v3582_v16 }
 0x968   :  { %3587 = vmatprep.subr.bf16.mxu1 %v3586_v0  ;;  %3653 = vmatpush3.bf16.msra.mxu0 %v3652_v18 }
 0x969   :  { %3244 = vmatprep.subr.mxu0 %v3711_v3 }
 0x96b   :  { %3589 = vmatpush3.bf16.msra.mxu1 %v3586_v0 }
 0x96c   :  { %3591 = vmatprep.subr.bf16.mxu1 %v3590_v10 }
 0x96f   :  { %3593 = vmatpush3.bf16.msra.mxu1 %v3590_v10 }
 0x970   :  { %3595 = vmatprep.subr.bf16.mxu1 %v3594_v22 }
 0x973   :  { %3597 = vmatpush3.bf16.msra.mxu1 %v3594_v22 }
 0x974   :  { %3599 = vmatprep.subr.bf16.mxu1 %v3598_v26 }
 0x976   :  { %3166 = vmatmul.mubr.f32.vlgmr.msra.gmra.mrb[14].mxu1 %v1609_v31 }
 0x977   :  { %3168 = vmatprep.mubr.f32.mxu1 %v1610_v28  ;;  %3601 = vmatpush3.bf16.msra.mxu1 %v3598_v26 }
 0x978   :  { %3603 = vmatprep.subr.bf16.mxu1 %v3602_v30 }
 0x97a   :  { %3169 = vmatmul.mubr.f32.gmra.mrb[16].mxu1 %v1611_v6 }
 0x97b   :  { %3605 = vmatpush3.bf16.msra.mxu1 %v3602_v30  ;;  %3203 = vmatprep.mubr.f32.mxu1 %v1819_v36 }
 0x97c   :  { %3607 = vmatprep.subr.bf16.mxu1 %v3606_v35 }
 0x97f   :  { %3609 = vmatpush3.bf16.msra.mxu1 %v3606_v35 }
 0x980   :  { %3611 = vmatprep.subr.bf16.mxu1 %v3610_v37 }
 0x983   :  { %3613 = vmatpush3.bf16.msra.mxu1 %v3610_v37 }
 0x984   :  { %3615 = vmatprep.subr.bf16.mxu1 %v3614_v40 }
 0x987   :  { %3617 = vmatpush3.bf16.msra.mxu1 %v3614_v40 }
 0x988   :  { %3619 = vmatprep.subr.bf16.mxu1 %v3618_v43 }
 0x98b   :  { %3621 = vmatpush3.bf16.msra.mxu1 %v3618_v43 }
 0x98c   :  { %3623 = vmatprep.subr.bf16.mxu1 %v3622_v46 }
 0x98f   :  { %3625 = vmatpush3.bf16.msra.mxu1 %v3622_v46 }
 0x990   :  { %3627 = vmatprep.subr.bf16.mxu1 %v3626_v49 }
 0x993   :  { %3629 = vmatpush3.bf16.msra.mxu1 %v3626_v49 }
 0x996   :  { %3204 = vmatmul.mubr.f32.vlgmr.msra.gmra.mrb[14].mxu1 %v1820_v7  ;;  %v2195_v7 = vld [vmem:[%s4562_s9] sm:$0x1] }
 0x997   :  { %3206 = vmatprep.mubr.f32.mxu1 %v1821_v8 }
 0x99a   :  { %3207 = vmatmul.mubr.f32.gmra.mrb[16].mxu1 %v1822_v11 }
 0xa69   :  { %v4478_v20 = vpop.f32.mrb[14].mxu1 }
 0xa6a   :  { %v4480_v21 = vpop.f32.mrb[15].mxu1 }
 0xa6b   :  { %v1929_v16 = vadd.f32 %v4478_v20, %v4480_v21 }
 0xa6d   :  { %v4484_v62 = vpop.f32.mrb[16].mxu1 }
 0xa6e   :  { %v4486_v63 = vpop.f32.mrb[17].mxu1 }
 0xa6f   :  { %v1930_v0 = vadd.f32 %v1929_v16, %v4486_v63 }
 0xa71   :  { %v1931_v2 = vadd.f32 %v4484_v62, %v1930_v0 }
 0xa73   :  { %v1932_v5 = vrot.slane %v1931_v2, 4 }
 0xa75   :  { %v1933_v10 = vadd.f32 %v1932_v5, %v1931_v2 }
 0xa77   :  { %v1934_v14 = vrot.slane %v1933_v10, 2 }
 0xa79   :  { %v1935_v19 = vadd.f32 %v1934_v14, %v1933_v10 }
 0xa7b   :  { %v1936_v22 = vrot.slane %v1935_v19, 1 }
 0xa7d   :  { %v1937_v24 = vadd.f32 %v1936_v22, %v1935_v19 }
 0xa7f   :  { %3242 = vmatmul.mubr.f32.vlgmr.msra.gmra.mrb[14].mxu0 %v1937_v24 }
 0xa80   :  { %3245 = vmatpush3.msra.mxu0 %v4493_v25  ;;  %3246 = vmatprep.mubr.msk.f32.mxu0 %vm3713_vm2, %v3711_v3 }
 0xa81   :  { %3654 = vmatprep.subr.bf16.mxu0 %v3712_v4 }
 0xb52   :  { %v2020_v26 = vpop.f32.mrb[14].mxu0 }
 0xb53   :  { %v2024_v27 = vmul.f32 0.001953125, %v2020_v26  ;;  %v3243_v29 = vpop.f32.mrb[15].mxu0 }
 0xb55   :  { %3247 = vmatmul.mubr.msk.f32.vlgmr.msra.gmra.mrb[16].mxu0 %vm489_vm3, %v2024_v27 }
 0xb56   :  { %3656 = vmatpush3.bf16.msra.mxu0 %v4326_v1  ;;  %3281 = vmatprep.mubr.msk.f32.mxu0 %vm3713_vm2, %v3711_v3 }
 0xb57   :  { %3657 = vmatprep.subr.bf16.mxu0 %v3712_v4 }
 0xb5a   :  { %3659 = vmatpush3.bf16.msra.mxu0 %v4332_v9 }
 0xb5b   :  { %3660 = vmatprep.subr.bf16.mxu0 %v3712_v4 }
 0xb5e   :  { %3662 = vmatpush3.bf16.msra.mxu0 %v4342_v13 }
 0xb5f   :  { %3663 = vmatprep.subr.bf16.mxu0 %v3712_v4 }
 0xb62   :  { %3665 = vmatpush3.bf16.msra.mxu0 %v3640_v51 }
 0xb63   :  { %3666 = vmatprep.subr.bf16.mxu0 %v3712_v4 }
 0xb66   :  { %3668 = vmatpush3.bf16.msra.mxu0 %v3643_v54 }
 0xb67   :  { %3669 = vmatprep.subr.bf16.mxu0 %v3712_v4 }
 0xb6a   :  { %3671 = vmatpush3.bf16.msra.mxu0 %v3646_v57 }
 0xb6b   :  { %3672 = vmatprep.subr.bf16.mxu0 %v3712_v4 }
 0xb6e   :  { %3674 = vmatpush3.bf16.msra.mxu0 %v3649_v60 }
 0xb6f   :  { %3675 = vmatprep.subr.bf16.mxu0 %v3712_v4 }
 0xb72   :  { %3677 = vmatpush3.bf16.msra.mxu0 %v3652_v18 }
 0xb73   :  { %3284 = vmatprep.subr.mxu0 %v3711_v3 }
 0xc28   :  { %v2095_v1 = vpop.f32.mrb[16].mxu0 }
 0xc29   :  { %v2102_v9 = vrot.slane %v2095_v1, %v4018_v38  ;;  %v3248_v13 = vpop.f32.mrb[17].mxu0 }
 0xc2b   :  { %v2103_v30 = vsub.f32 %v4480_v21, %v2102_v9  ;;  %v2104_v31 = vsub.f32 %v4478_v20, %v2102_v9  ;;  %v2105_v32 = vsub.f32 %v4486_v63, %v2102_v9  ;;  %v2106_v23 = vsub.f32 %v4484_v62, %v2102_v9 }
 0xc2d   :  { %v2107_v28 = vmul.f32 %v2103_v30, %v2103_v30  ;;  %v2108_v35 = vmul.f32 %v2104_v31, %v2104_v31  ;;  %v2109_v6 = vmul.f32 %v2105_v32, %v2105_v32  ;;  %v2110_v4 = vmul.f32 %v2106_v23, %v2106_v23 }
 0xc2f   :  { %v2111_v33 = vadd.f32 %v2108_v35, %v2107_v28 }
 0xc31   :  { %v2112_v34 = vadd.f32 %v2111_v33, %v2109_v6 }
 0xc33   :  { %v2113_v36 = vadd.f32 %v2112_v34, %v2110_v4 }
 0xc35   :  { %v2114_v37 = vrot.slane %v2113_v36, 4 }
 0xc37   :  { %v2115_v39 = vadd.f32 %v2114_v37, %v2113_v36 }
 0xc39   :  { %v2116_v15 = vrot.slane %v2115_v39, 2 }
 0xc3b   :  { %v2117_v40 = vadd.f32 %v2116_v15, %v2115_v39 }
 0xc3d   :  { %v2118_v41 = vrot.slane %v2117_v40, 1 }
 0xc3f   :  { %v2119_v42 = vadd.f32 %v2118_v41, %v2117_v40 }
 0xc41   :  { %3282 = vmatmul.mubr.f32.vlgmr.msra.gmra.mrb[18].mxu0 %v2119_v42 }
 0xc42   :  { %3285 = vmatpush3.msra.mxu0 %v4493_v25  ;;  %3286 = vmatprep.mubr.msk.f32.mxu0 %vm3713_vm2, %v3711_v3 }
 0xc43   :  { %3289 = vmatprep.subr.mxu0 %v3711_v3 }
 0xd14   :  { %v2186_v43 = vpop.f32.mrb[18].mxu0 }
 0xd15   :  { %v2190_v44 = vmul.f32 0.001953125, %v2186_v43  ;;  %v3283_v45 = vpop.f32.mrb[19].mxu0 }
 0xd17   :  { %v2192_v46 = vadd.f32 1e-05, %v2190_v44 }
 0xd19   :  { %3709 = vrsqrt.f32 %v2192_v46 }
 0xd23   :  { %v3710_v48 = vpop.eup %3709 }
 0xd24   :  { %v2194_v49 = vmul.f32 %v3710_v48, %v2191_v47 }
 0xd26   :  { %3287 = vmatmul.mubr.msk.f32.vlgmr.msra.gmra.mrb[20].mxu0 %vm489_vm3, %v2194_v49  ;;  %v2196_v8 = vmul.f32 %v2194_v49, %v2024_v27 }
 0xd27   :  { %3290 = vmatpush3.msra.mxu0 %v4493_v25  ;;  %3291 = vmatprep.mubr.msk.f32.mxu0 %vm3713_vm2, %v3711_v3 }
 0xd28   :  { %v2197_v11 = vsub.f32 %v2195_v7, %v2196_v8 }
 0xd2a   :  { %3292 = vmatmul.mubr.msk.f32.vlgmr.msra.gmra.mrb[22].mxu0 %vm489_vm3, %v2197_v11 }
 0xdf9   :  { %v2267_v12 = vpop.f32.mrb[20].mxu0 }
 0xdfa   :  { %v2347_v50 = vrot.slane %v2267_v12, %v4018_v38  ;;  %v3288_v51 = vpop.f32.mrb[21].mxu0 }
 0xdfc   :  { %v2348_v52 = vmul.f32 %v2347_v50, %v4480_v21  ;;  %v2349_v53 = vmul.f32 %v4478_v20, %v2347_v50  ;;  %v2350_v54 = vmul.f32 %v2347_v50, %v4486_v63  ;;  %v2351_v55 = vmul.f32 %v4484_v62, %v2347_v50 }
 0xdfd   :  { %v2340_v56 = vpop.f32.mrb[22].mxu0 }
 0xdfe   :  { %v2355_v57 = vrot.slane %v2340_v56, %v4018_v38  ;;  %v3293_v58 = vpop.f32.mrb[23].mxu0 }
 0xe00   :  { %v2356_v3 = vadd.f32 %v2355_v57, %v2348_v52  ;;  %v2357_v59 = vadd.f32 %v2355_v57, %v2349_v53  ;;  %v2358_v60 = vadd.f32 %v2355_v57, %v2350_v54  ;;  %v2359_v61 = vadd.f32 %v2355_v57, %v2351_v55 }
 0xe02   :  { %2360 = vst [vmem:[%s4563_s12] sm:$0xff] %v2356_v3  ;;  %2361 = vst [vmem:[%s4563_s12 + $0x8] sm:$0xff] %v2357_v59 }
 0xe03   :  { %2362 = vst [vmem:[%s4563_s12 + $0x10] sm:$0xff] %v2358_v60  ;;  %2363 = vst [vmem:[%s4563_s12 + $0x18] sm:$0xff] %v2359_v61 }

</bundles_post_ra>
